<compile_context>
chip_gen: v7x
topology: tpu7x:2x2x1
jax: 0.10.0
libtpu: 0.0.40
codegen_flags: <defaults>
</compile_context>

<pallas_src>
import functools
import math

import numpy as np
import jax
import jax.numpy as jnp
from jax.experimental import pallas as pl
from jax.experimental.pallas import tpu as pltpu


# Moderate tile targets that stay comfortable on v7x's 64 MiB VMEM while amortizing the
# ~0.35 us per-grid-step overhead.  (On v5e/v6e's 128 MiB VMEM these can be bumped to
# 512/1024; 256-multiples keep v6e/v7x's 256x256 MXU panels full.)
_TM_TARGET, _TN_TARGET, _TK_TARGET = 256, 512, 512


def _round_up(x, m):
    return ((x + m - 1) // m) * m


def _pick_tile(extent, target, aligns=(8,)):
    """Largest divisor of `extent` <= target that is a multiple of one of `aligns`
    (tried in preference order); falls back to the full extent (full-dim blocks are
    always legal)."""
    if extent <= target:
        return extent
    for align in aligns:
        if extent % align:
            continue
        t = (target // align) * align
        while t >= align:
            if extent % t == 0:
                return t
            t -= align
    return extent


def _vmem_limit(buffer_bytes):
    """Right-sized scoped-VMEM request: double-buffered pipeline footprint plus compiler
    scratch headroom, capped well inside v7x's 64 MiB physical VMEM."""
    return int(min(max(2 * buffer_bytes + (6 << 20), 16 << 20), 40 << 20))


# --------------- fused tiled matmul (+fused-LayerNorm prologue, +bias/GELU/residual) ----------------

def _mm_kernel(*refs, has_ln, has_bias, activation, has_res):
    x_ref, w_ref = refs[0], refs[1]
    i = 2
    g_ref = bln_ref = b_ref = r_ref = None
    if has_ln:
        g_ref, bln_ref = refs[i], refs[i + 1]
        i += 2
    if has_bias:
        b_ref = refs[i]
        i += 1
    if has_res:
        r_ref = refs[i]
        i += 1
    o_ref, acc_ref = refs[i], refs[i + 1]

    k = pl.program_id(2)

    @pl.when(k == 0)
    def _():
        acc_ref[...] = jnp.zeros_like(acc_ref)

    x = x_ref[...]
    if has_ln:
        # Fused LayerNorm prologue (requires tk == K so each row is whole).  Stats in f32,
        # then cast to the MXU operand dtype (bf16 on the fast path).
        xf = x.astype(jnp.float32)
        mean = jnp.mean(xf, axis=-1, keepdims=True)
        var = jnp.mean((xf - mean) ** 2, axis=-1, keepdims=True)
        xhat = (xf - mean) * jax.lax.rsqrt(var + 1e-5)          # torch LayerNorm eps
        x = (xhat * g_ref[...] + bln_ref[...]).astype(w_ref.dtype)

    acc_ref[...] += jnp.dot(x, w_ref[...], preferred_element_type=jnp.float32)

    @pl.when(k == pl.num_programs(2) - 1)
    def _():
        y = acc_ref[...]                                         # f32 epilogue math
        if has_bias:
            y = y + b_ref[...]
        if activation == "gelu":
            # TODO(synk): tanh-approx GELU (EUP tanh); PyTorch nn.GELU defaults to exact erf.
            y = 0.5 * y * (1.0 + jnp.tanh(0.7978845608028654 * (y + 0.044715 * y * y * y)))
        if has_res:
            y = y + r_ref[...]
        o_ref[...] = y.astype(o_ref.dtype)


def matmul_fused(x, w, bias=None, residual=None, activation=None, ln=None,
                 compute_dtype=None, out_dtype=jnp.float32):
    """y = [LN](x) @ w [+ bias] [-> GELU] [+ residual]; tiled, pipelined, f32 accumulation.

    `ln=(gamma, beta)` fuses a LayerNorm prologue (forces tk = K).  `compute_dtype`
    casts the MXU operands (e.g. bf16).  Epilogue math stays f32; output is `out_dtype`.
    """
    M0, K = x.shape
    N = w.shape[1]

    if compute_dtype is not None:
        w = w.astype(compute_dtype)
        if ln is None:
            x = x.astype(compute_dtype)

    # Pad rows to a sublane multiple so tile picking never degenerates for awkward B*Nv.
    M = _round_up(M0, 8)
    if M != M0:
        x = jnp.pad(x, ((0, M - M0), (0, 0)))
        if residual is not None:
            residual = jnp.pad(residual, ((0, M - M0), (0, 0)))

    tm = _pick_tile(M, _TM_TARGET, (8,))
    tn = _pick_tile(N, _TN_TARGET, (256, 128))
    tk = K if ln is not None else _pick_tile(K, _TK_TARGET, (256, 128))
    grid = (M // tm, N // tn, K // tk)

    x_isz = jnp.dtype(x.dtype).itemsize
    w_isz = jnp.dtype(w.dtype).itemsize
    o_isz = jnp.dtype(out_dtype).itemsize

    in_specs = [pl.BlockSpec((tm, tk), lambda i, j, k: (i, k)),
                pl.BlockSpec((tk, tn), lambda i, j, k: (k, j))]
    args = [x, w]
    buf_bytes = tm * tk * x_isz + tk * tn * w_isz + tm * tn * o_isz
    if ln is not None:
        gamma, beta = ln
        in_specs += [pl.BlockSpec((1, tk), lambda i, j, k: (0, 0)),
                     pl.BlockSpec((1, tk), lambda i, j, k: (0, 0))]
        args += [gamma.reshape(1, K).astype(jnp.float32),
                 beta.reshape(1, K).astype(jnp.float32)]
        buf_bytes += 2 * tk * 4
    if bias is not None:
        in_specs.append(pl.BlockSpec((1, tn), lambda i, j, k: (0, j)))
        args.append(bias.reshape(1, N).astype(jnp.float32))
        buf_bytes += tn * 4
    if residual is not None:
        in_specs.append(pl.BlockSpec((tm, tn), lambda i, j, k: (i, j)))
        args.append(residual.astype(jnp.float32))
        buf_bytes += tm * tn * 4
    buf_bytes += tm * tn * 4                     # f32 accumulator scratch

    cost = pl.CostEstimate(
        flops=int(2 * M * N * K),
        transcendentals=int(M * N) if activation == "gelu" else 0,
        bytes_accessed=int(M * K * x_isz + K * N * w_isz + M * N * o_isz
                           + (N * 4 if bias is not None else 0)
                           + (M * N * 4 if residual is not None else 0)))

    kernel = functools.partial(_mm_kernel, has_ln=ln is not None,
                               has_bias=bias is not None, activation=activation,
                               has_res=residual is not None)
    out = pl.pallas_call(
        kernel,
        grid=grid,
        in_specs=in_specs,
        out_specs=pl.BlockSpec((tm, tn), lambda i, j, k: (i, j)),
        out_shape=jax.ShapeDtypeStruct((M, N), out_dtype),
        scratch_shapes=[pltpu.VMEM((tm, tn), jnp.float32)],
        compiler_params=pltpu.CompilerParams(
            dimension_semantics=("parallel", "parallel", "arbitrary"),
            vmem_limit_bytes=_vmem_limit(buf_bytes)),
        cost_estimate=cost,
    )(*args)
    return out[:M0] if M != M0 else out


# -------------------------------- standalone LayerNorm (final norm only) ---------------------------

def _layernorm_kernel(x_ref, g_ref, b_ref, o_ref):
    x = x_ref[...]
    mean = jnp.mean(x, axis=-1, keepdims=True)
    var = jnp.mean((x - mean) ** 2, axis=-1, keepdims=True)
    xhat = (x - mean) * jax.lax.rsqrt(var + 1e-5)               # torch LayerNorm eps
    o_ref[...] = xhat * g_ref[...] + b_ref[...]


def layernorm(x2d, gamma, beta, tm_target=512):
    M0, C = x2d.shape
    M = _round_up(M0, 8)
    if M != M0:
        x2d = jnp.pad(x2d, ((0, M - M0), (0, 0)))
    tm = _pick_tile(M, tm_target, (8,))
    buf = 2 * tm * C * 4 + 2 * C * 4
    out = pl.pallas_call(
        _layernorm_kernel,
        grid=(M // tm,),
        in_specs=[pl.BlockSpec((tm, C), lambda i: (i, 0)),
                  pl.BlockSpec((1, C), lambda i: (0, 0)),
                  pl.BlockSpec((1, C), lambda i: (0, 0))],
        out_specs=pl.BlockSpec((tm, C), lambda i: (i, 0)),
        out_shape=jax.ShapeDtypeStruct((M, C), jnp.float32),
        compiler_params=pltpu.CompilerParams(
            dimension_semantics=("parallel",),
            vmem_limit_bytes=_vmem_limit(buf)),
    )(x2d.astype(jnp.float32), gamma.reshape(1, C).astype(jnp.float32),
      beta.reshape(1, C).astype(jnp.float32))
    return out[:M0] if M != M0 else out


# ------------------- attention: column-sliced qkv operands, VMEM-streamed head outputs -------------

def _attn_kernel(q_ref, k_ref, v_ref, o_ref, o_acc, *, num_heads, dh, scale):
    q_all = q_ref[0]          # (tq,  C)  — only q columns were DMA'd
    k_all = k_ref[0]          # (Nkv, C)  — only k columns
    v_all = v_ref[0]          # (Nkv, C)  — only v columns
    for h in range(num_heads):
        sl = slice(h * dh, (h + 1) * dh)
        q = q_all[:, sl] * scale                              # pre-scale once (tq x dh)
        k = k_all[:, sl]
        v = v_all[:, sl]
        s = jax.lax.dot_general(q, k, (((1,), (1,)), ((), ())),
                                preferred_element_type=jnp.float32)   # (tq, Nkv) f32
        s = s - jnp.max(s, axis=-1, keepdims=True)            # softmax stats in f32
        p = jnp.exp(s)
        p = p * pl.reciprocal(jnp.sum(p, axis=-1, keepdims=True), approx=True)
        # Stream each head's output into the VMEM scratch so its vregs retire immediately
        # (no big live concatenate -> no spill traffic at tq*C scale).
        o_acc[:, sl] = jnp.dot(p.astype(v.dtype), v, preferred_element_type=jnp.float32)
    o_ref[0] = o_acc[...].astype(o_ref.dtype)                 # single lane-dense (tq, C) store


def attention(qkv, num_heads, scale, tq_target=128, out_dtype=jnp.float32):
    """qkv: (B, Nv, 3C) packed [q|k|v] -> (B, Nv, C).  Column-sliced BlockSpecs DMA only
    the q / k / v slabs actually needed (no 3C over-fetch, no XLA transposes)."""
    B, Nv, threeC = qkv.shape
    C = threeC // 3
    dh = C // num_heads
    tq = _pick_tile(Nv, tq_target, (8,))
    grid = (B, Nv // tq)

    isz = jnp.dtype(qkv.dtype).itemsize
    o_isz = jnp.dtype(out_dtype).itemsize
    buf = tq * C * isz + 2 * Nv * C * isz + tq * C * o_isz + tq * C * 4

    cost = pl.CostEstimate(
        flops=int(4 * B * num_heads * Nv * Nv * dh),
        transcendentals=int(B * num_heads * Nv * Nv),
        bytes_accessed=int(3 * B * Nv * C * isz + B * Nv * C * o_isz))

    # TODO(synk): flash-style online-softmax KV tiling for very long Nv (low mask ratios);
    # for VideoMAE-style masking Nv is small and the resident (Nv, C) k/v slabs fit VMEM.
    return pl.pallas_call(
        functools.partial(_attn_kernel, num_heads=num_heads, dh=dh, scale=scale),
        grid=grid,
        in_specs=[pl.BlockSpec((1, tq, C), lambda b, qi: (b, qi, 0)),   # q columns
                  pl.BlockSpec((1, Nv, C), lambda b, qi: (b, 0, 1)),    # k columns
                  pl.BlockSpec((1, Nv, C), lambda b, qi: (b, 0, 2))],   # v columns
        out_specs=pl.BlockSpec((1, tq, C), lambda b, qi: (b, qi, 0)),
        out_shape=jax.ShapeDtypeStruct((B, Nv, C), out_dtype),
        scratch_shapes=[pltpu.VMEM((tq, C), jnp.float32)],
        compiler_params=pltpu.CompilerParams(
            dimension_semantics=("parallel", "parallel"),
            vmem_limit_bytes=_vmem_limit(buf)),
        cost_estimate=cost,
    )(qkv, qkv, qkv)


# ------------------------------------ parameter setup ------------------------------------

def get_sinusoid_encoding_table(n_position, d_hid):
    pos = np.arange(n_position, dtype=np.float64)[:, None]
    i = np.arange(d_hid, dtype=np.float64)[None, :]
    angle = pos / np.power(10000.0, 2.0 * (i // 2) / d_hid)
    table = np.zeros((n_position, d_hid), dtype=np.float32)
    table[:, 0::2] = np.sin(angle[:, 0::2])
    table[:, 1::2] = np.cos(angle[:, 1::2])
    return jnp.asarray(table[None])                           # (1, n_position, d_hid)


def _xavier_uniform(key, fan_in, fan_out):
    limit = math.sqrt(6.0 / (fan_in + fan_out))
    return jax.random.uniform(key, (fan_in, fan_out), jnp.float32, -limit, limit)


def init_params(key, *, in_chans, embed_dim, depth, num_heads, mlp_ratio,
                patch_size, tubelet_size, num_patches):
    del num_heads
    hidden = int(embed_dim * mlp_ratio)
    keys = jax.random.split(key, 2 + 4 * depth)
    ki = iter(keys)

    # PatchEmbed Conv3d (default torch init; not touched by _init_weights)
    fan_in = in_chans * tubelet_size * patch_size * patch_size
    bound = 1.0 / math.sqrt(fan_in)
    conv_w = jax.random.uniform(
        next(ki), (embed_dim, in_chans, tubelet_size, patch_size, patch_size),
        jnp.float32, -bound, bound)
    conv_b = jax.random.uniform(next(ki), (embed_dim,), jnp.float32, -bound, bound)

    blocks = []
    for _ in range(depth):
        blocks.append({
            "ln1_g": jnp.ones((embed_dim,), jnp.float32),
            "ln1_b": jnp.zeros((embed_dim,), jnp.float32),
            "qkv_w": _xavier_uniform(next(ki), embed_dim, 3 * embed_dim),   # qkv_bias=False
            "proj_w": _xavier_uniform(next(ki), embed_dim, embed_dim),
            "proj_b": jnp.zeros((embed_dim,), jnp.float32),
            "ln2_g": jnp.ones((embed_dim,), jnp.float32),
            "ln2_b": jnp.zeros((embed_dim,), jnp.float32),
            "fc1_w": _xavier_uniform(next(ki), embed_dim, hidden),
            "fc1_b": jnp.zeros((hidden,), jnp.float32),
            "fc2_w": _xavier_uniform(next(ki), hidden, embed_dim),
            "fc2_b": jnp.zeros((embed_dim,), jnp.float32),
        })

    return {
        "conv_w": conv_w,
        "conv_b": conv_b,
        "pos_embed": get_sinusoid_encoding_table(num_patches, embed_dim),
        "blocks": blocks,
        "norm_g": jnp.ones((embed_dim,), jnp.float32),
        "norm_b": jnp.zeros((embed_dim,), jnp.float32),
        # head = nn.Identity() (num_classes = 0)
    }


# ---------------------------------------- forward ----------------------------------------

def forward(params, x, mask, *, num_vis, num_heads, patch_size, tubelet_size,
            compute_dtype=jnp.bfloat16):
    """x: (B, C, T, H, W) float32; mask: (B, num_patches) bool (True = masked).

    compute_dtype=bf16 (default) runs all MXU matmuls (including attention) with bf16
    operands + f32 accumulation and stores intermediate activations (qkv, attention out,
    fc1 out) in bf16; the residual stream, LayerNorm stats, softmax stats and epilogues
    stay f32.  Pass compute_dtype=None for a full-f32 reference path.
    """
    B, Cin, T, H, W = x.shape
    p, tkz = patch_size, tubelet_size
    C = params["conv_w"].shape[0]
    tT, tH, tW = T // tkz, H // p, W // p
    N = tT * tH * tW
    act_dtype = compute_dtype if compute_dtype is not None else jnp.float32

    # ---- PatchEmbed: Conv3d(kernel=stride=(tk,p,p)) as im2col + fused matmul(+bias+pos) ----
    xp = x.reshape(B, Cin, tT, tkz, tH, p, tW, p)
    xp = xp.transpose(0, 2, 4, 6, 1, 3, 5, 7).reshape(B * N, Cin * tkz * p * p)
    w_pe = params["conv_w"].reshape(C, -1).T                           # (Cin*tk*p*p, C)
    pos = jnp.broadcast_to(params["pos_embed"], (B, N, C)).reshape(B * N, C)
    tok = matmul_fused(xp, w_pe, bias=params["conv_b"], residual=pos,
                       compute_dtype=compute_dtype, out_dtype=jnp.float32)
    tok = tok.reshape(B, N, C)

    # ---- keep visible tokens: x[~mask].reshape(B, -1, C) ----
    # TODO(synk): boolean masking stays as an XLA argsort+gather (data-dependent gather).
    vis_idx = jnp.argsort(mask.astype(jnp.int32), axis=1, stable=True)[:, :num_vis]
    xv = jnp.take_along_axis(tok, vis_idx[:, :, None], axis=1)          # (B, Nv, C)

    Nv = num_vis
    dh = C // num_heads
    scale = dh ** -0.5
    xf = xv.reshape(B * Nv, C)                                          # f32 residual stream

    for blk in params["blocks"]:
        # attention branch: fused LN->qkv (no bias), column-sliced attention, proj(+bias+res)
        qkv = matmul_fused(xf, blk["qkv_w"], ln=(blk["ln1_g"], blk["ln1_b"]),
                           compute_dtype=compute_dtype, out_dtype=act_dtype)     # (B*Nv, 3C)
        o = attention(qkv.reshape(B, Nv, 3 * C), num_heads, scale,
                      out_dtype=act_dtype)                                       # (B, Nv, C)
        xf = matmul_fused(o.reshape(B * Nv, C), blk["proj_w"], bias=blk["proj_b"],
                          residual=xf, compute_dtype=compute_dtype,
                          out_dtype=jnp.float32)

        # MLP branch: fused LN->fc1(+bias+GELU), fc2(+bias+residual)
        h = matmul_fused(xf, blk["fc1_w"], ln=(blk["ln2_g"], blk["ln2_b"]),
                         bias=blk["fc1_b"], activation="gelu",
                         compute_dtype=compute_dtype, out_dtype=act_dtype)
        xf = matmul_fused(h, blk["fc2_w"], bias=blk["fc2_b"], residual=xf,
                          compute_dtype=compute_dtype, out_dtype=jnp.float32)

    xf = layernorm(xf, params["norm_g"], params["norm_b"])              # final norm
    return xf.reshape(B, Nv, C)                                         # head = Identity


# ------------------------------------------ main ------------------------------------------

if __name__ == "__main__":
    # small but consistent config: 16x16 frames, 4 frames, 8x8 patches, tubelet 2
    B, Cin, T, H, W = 2, 3, 4, 16, 16
    patch_size, tubelet_size = 8, 2
    embed_dim, depth, num_heads, mlp_ratio = 128, 2, 4, 4.0
    num_patches = (T // tubelet_size) * (H // patch_size) * (W // patch_size)   # 8

    key = jax.random.PRNGKey(0)
    kx, kp = jax.random.split(key, 2)
    x = jax.random.normal(kx, (B, Cin, T, H, W), jnp.float32)

    # deterministic mask: mask half the tokens, same count per row (required by reshape)
    mask_np = np.zeros((B, num_patches), dtype=bool)
    mask_np[:, ::2] = True
    mask = jnp.asarray(mask_np)
    num_vis = num_patches - int(mask_np[0].sum())                       # 4 visible tokens/sample

    params = init_params(
        kp, in_chans=Cin, embed_dim=embed_dim, depth=depth, num_heads=num_heads,
        mlp_ratio=mlp_ratio, patch_size=patch_size, tubelet_size=tubelet_size,
        num_patches=num_patches)

    fwd = jax.jit(functools.partial(
        forward, num_vis=num_vis, num_heads=num_heads,
        patch_size=patch_size, tubelet_size=tubelet_size))

    out = fwd(params, x, mask)
    jax.block_until_ready(out)
    assert out.shape == (B, num_vis, embed_dim), out.shape
    assert bool(jnp.all(jnp.isfinite(out)))
    print("KERNEL_OK")
</pallas_src>

<mosaic_0001>
module attributes {stable_mosaic.version = 11 : i64} {
  func.func @_mm_kernel(%arg0: i32, %arg1: i32, %arg2: i32, %arg3: memref<16x384xbf16, #tpu.memory_space<vmem>>, %arg4: memref<384x128xbf16, #tpu.memory_space<vmem>>, %arg5: memref<1x128xf32, #tpu.memory_space<vmem>>, %arg6: memref<16x128xf32, #tpu.memory_space<vmem>>, %arg7: memref<16x128xf32, #tpu.memory_space<vmem>>, %arg8: memref<16x128xf32, #tpu.memory_space<vmem>>) attributes {dimension_semantics = [#tpu.dimension_semantics<parallel>, #tpu.dimension_semantics<parallel>, #tpu.dimension_semantics<arbitrary>], iteration_bounds = array<i64: 1, 1, 1>, scalar_prefetch = 0 : i64, scratch_operands = 1 : i64, tpu.core_type = #tpu.core_type<tc>, window_params = [{transform_indices = @transform_0, window_bounds = array<i64: 16, 384>}, {transform_indices = @transform_1, window_bounds = array<i64: 384, 128>}, {transform_indices = @transform_2, window_bounds = array<i64: 1, 128>}, {transform_indices = @transform_3, window_bounds = array<i64: 16, 128>}, {transform_indices = @transform_4, window_bounds = array<i64: 16, 128>}]} {
    %c0_i32 = arith.constant 0 : i32
    %0 = arith.cmpi eq, %arg2, %c0_i32 : i32
    %1 = arith.extui %0 : i1 to i32
    %c0_i32_0 = arith.constant 0 : i32
    %2 = arith.cmpi ne, %1, %c0_i32_0 : i32
    scf.if %2 {
      %cst_10 = arith.constant 0.000000e+00 : f32
      %12 = vector.broadcast %cst_10 : f32 to vector<16x128xf32>
      %c0_11 = arith.constant 0 : index
      %c0_12 = arith.constant 0 : index
      %13 = vector.load %arg8[%c0_11, %c0_12] : memref<16x128xf32, #tpu.memory_space<vmem>>, vector<16x128xf32>
      tpu.vector_store %arg8[%c0_11, %c0_12], %12 {strides = array<i32>} : memref<16x128xf32, #tpu.memory_space<vmem>>, vector<16x128xf32>,
    } else {
    }
    %c0 = arith.constant 0 : index
    %c0_1 = arith.constant 0 : index
    %3 = vector.load %arg3[%c0, %c0_1] : memref<16x384xbf16, #tpu.memory_space<vmem>>, vector<16x384xbf16>
    %c0_2 = arith.constant 0 : index
    %c0_3 = arith.constant 0 : index
    %4 = vector.load %arg8[%c0_2, %c0_3] : memref<16x128xf32, #tpu.memory_space<vmem>>, vector<16x128xf32>
    %c0_4 = arith.constant 0 : index
    %c0_5 = arith.constant 0 : index
    %5 = vector.load %arg4[%c0_4, %c0_5] : memref<384x128xbf16, #tpu.memory_space<vmem>>, vector<384x128xbf16>
    %cst = arith.constant dense<0.000000e+00> : vector<16x128xf32>
    %6 = tpu.matmul %3, %5, %cst {dimension_numbers = #tpu.dot_dimension_numbers<[1], [0], [0], [1], [0, 0, 1, 1], [], []>} : vector<16x384xbf16>, vector<384x128xbf16>, vector<16x128xf32> -> vector<16x128xf32>
    %7 = arith.addf %4, %6 : vector<16x128xf32>
    %c0_6 = arith.constant 0 : index
    %c0_7 = arith.constant 0 : index
    %8 = vector.load %arg8[%c0_6, %c0_7] : memref<16x128xf32, #tpu.memory_space<vmem>>, vector<16x128xf32>
    tpu.vector_store %arg8[%c0_6, %c0_7], %7 {strides = array<i32>} : memref<16x128xf32, #tpu.memory_space<vmem>>, vector<16x128xf32>,
    %c0_i32_8 = arith.constant 0 : i32
    %9 = arith.cmpi eq, %arg2, %c0_i32_8 : i32
    %10 = arith.extui %9 : i1 to i32
    %c0_i32_9 = arith.constant 0 : i32
    %11 = arith.cmpi ne, %10, %c0_i32_9 : i32
    scf.if %11 {
      %c0_10 = arith.constant 0 : index
      %c0_11 = arith.constant 0 : index
      %12 = vector.load %arg8[%c0_10, %c0_11] : memref<16x128xf32, #tpu.memory_space<vmem>>, vector<16x128xf32>
      %c0_12 = arith.constant 0 : index
      %c0_13 = arith.constant 0 : index
      %13 = vector.load %arg5[%c0_12, %c0_13] : memref<1x128xf32, #tpu.memory_space<vmem>>, vector<1x128xf32>
      %14 = vector.broadcast %13 : vector<1x128xf32> to vector<16x128xf32>
      %15 = arith.addf %12, %14 : vector<16x128xf32>
      %c0_14 = arith.constant 0 : index
      %c0_15 = arith.constant 0 : index
      %16 = vector.load %arg6[%c0_14, %c0_15] : memref<16x128xf32, #tpu.memory_space<vmem>>, vector<16x128xf32>
      %17 = arith.addf %15, %16 : vector<16x128xf32>
      %c0_16 = arith.constant 0 : index
      %c0_17 = arith.constant 0 : index
      %18 = vector.load %arg7[%c0_16, %c0_17] : memref<16x128xf32, #tpu.memory_space<vmem>>, vector<16x128xf32>
      tpu.vector_store %arg7[%c0_16, %c0_17], %17 {strides = array<i32>} : memref<16x128xf32, #tpu.memory_space<vmem>>, vector<16x128xf32>,
    } else {
    }
    return
  }
  func.func @transform_0(%arg0: i32, %arg1: i32, %arg2: i32) -> (i32, i32) {
    %c0_i32 = arith.constant 0 : i32
    return %arg0, %arg2 : i32, i32
  }
  func.func @transform_1(%arg0: i32, %arg1: i32, %arg2: i32) -> (i32, i32) {
    %c0_i32 = arith.constant 0 : i32
    return %arg2, %arg1 : i32, i32
  }
  func.func @transform_2(%arg0: i32, %arg1: i32, %arg2: i32) -> (i32, i32) {
    %c0_i32 = arith.constant 0 : i32
    %c0_i32_0 = arith.constant 0 : i32
    return %c0_i32, %arg1 : i32, i32
  }
  func.func @transform_3(%arg0: i32, %arg1: i32, %arg2: i32) -> (i32, i32) {
    %c0_i32 = arith.constant 0 : i32
    return %arg0, %arg1 : i32, i32
  }
  func.func @transform_4(%arg0: i32, %arg1: i32, %arg2: i32) -> (i32, i32) {
    %c0_i32 = arith.constant 0 : i32
    return %arg0, %arg1 : i32, i32
  }
}

module attributes {stable_mosaic.version = 11 : i64} {
  func.func @_attn_kernel(%arg0: i32, %arg1: i32, %arg2: memref<1x4x128xbf16, #tpu.memory_space<vmem>>, %arg3: memref<1x4x128xbf16, #tpu.memory_space<vmem>>, %arg4: memref<1x4x128xbf16, #tpu.memory_space<vmem>>, %arg5: memref<1x4x128xbf16, #tpu.memory_space<vmem>>, %arg6: memref<4x128xf32, #tpu.memory_space<vmem>>) attributes {dimension_semantics = [#tpu.dimension_semantics<parallel>, #tpu.dimension_semantics<parallel>], iteration_bounds = array<i64: 2, 1>, scalar_prefetch = 0 : i64, scratch_operands = 1 : i64, tpu.core_type = #tpu.core_type<tc>, window_params = [{transform_indices = @transform_0, window_bounds = array<i64: 1, 4, 128>}, {transform_indices = @transform_1, window_bounds = array<i64: 1, 4, 128>}, {transform_indices = @transform_2, window_bounds = array<i64: 1, 4, 128>}, {transform_indices = @transform_3, window_bounds = array<i64: 1, 4, 128>}]} {
    %c0 = arith.constant 0 : index
    %c0_0 = arith.constant 0 : index
    %c0_1 = arith.constant 0 : index
    %0 = vector.load %arg2[%c0, %c0_0, %c0_1] : memref<1x4x128xbf16, #tpu.memory_space<vmem>>, vector<1x4x128xbf16>
    %1 = vector.shape_cast %0 : vector<1x4x128xbf16> to vector<4x128xbf16>
    %c0_2 = arith.constant 0 : index
    %c0_3 = arith.constant 0 : index
    %c0_4 = arith.constant 0 : index
    %2 = vector.load %arg3[%c0_2, %c0_3, %c0_4] : memref<1x4x128xbf16, #tpu.memory_space<vmem>>, vector<1x4x128xbf16>
    %3 = vector.shape_cast %2 : vector<1x4x128xbf16> to vector<4x128xbf16>
    %c0_5 = arith.constant 0 : index
    %c0_6 = arith.constant 0 : index
    %c0_7 = arith.constant 0 : index
    %4 = vector.load %arg4[%c0_5, %c0_6, %c0_7] : memref<1x4x128xbf16, #tpu.memory_space<vmem>>, vector<1x4x128xbf16>
    %5 = vector.shape_cast %4 : vector<1x4x128xbf16> to vector<4x128xbf16>
    %6 = vector.extract_strided_slice %1 {offsets = [0, 0], sizes = [4, 32], strides = [1, 1]} : vector<4x128xbf16> to vector<4x32xbf16>
    %cst = arith.constant 1.767580e-01 : bf16
    %7 = vector.broadcast %cst : bf16 to vector<4x32xbf16>
    %8 = arith.mulf %6, %7 : vector<4x32xbf16>
    %9 = vector.extract_strided_slice %3 {offsets = [0, 0], sizes = [4, 32], strides = [1, 1]} : vector<4x128xbf16> to vector<4x32xbf16>
    %10 = vector.extract_strided_slice %5 {offsets = [0, 0], sizes = [4, 32], strides = [1, 1]} : vector<4x128xbf16> to vector<4x32xbf16>
    %cst_8 = arith.constant dense<0.000000e+00> : vector<4x4xf32>
    %11 = tpu.matmul %8, %9, %cst_8 {dimension_numbers = #tpu.dot_dimension_numbers<[1], [1], [0], [0], [0, 0, 1, 0], [], []>} : vector<4x32xbf16>, vector<4x32xbf16>, vector<4x4xf32> -> vector<4x4xf32>
    %cst_9 = arith.constant dense<0xFF800000> : vector<4xf32>
    %12 = vector.multi_reduction <maximumf>, %11, %cst_9 [1] : vector<4x4xf32> to vector<4xf32>
    %13 = vector.shape_cast %12 : vector<4xf32> to vector<4x1xf32>
    %14 = vector.broadcast %13 : vector<4x1xf32> to vector<4x4xf32>
    %15 = arith.subf %11, %14 : vector<4x4xf32>
    %16 = math.exp %15 : vector<4x4xf32>
    %cst_10 = arith.constant dense<0.000000e+00> : vector<4xf32>
    %17 = vector.multi_reduction <add>, %16, %cst_10 [1] : vector<4x4xf32> to vector<4xf32>
    %18 = vector.shape_cast %17 : vector<4xf32> to vector<4x1xf32>
    %19 = tpu.reciprocal %18 {approx = true} : vector<4x1xf32> -> vector<4x1xf32>
    %20 = vector.broadcast %19 : vector<4x1xf32> to vector<4x4xf32>
    %21 = arith.mulf %16, %20 : vector<4x4xf32>
    %22 = arith.truncf %21 : vector<4x4xf32> to vector<4x4xbf16>
    %cst_11 = arith.constant dense<0.000000e+00> : vector<4x32xf32>
    %23 = tpu.matmul %22, %10, %cst_11 {dimension_numbers = #tpu.dot_dimension_numbers<[1], [0], [0], [1], [0, 0, 1, 1], [], []>} : vector<4x4xbf16>, vector<4x32xbf16>, vector<4x32xf32> -> vector<4x32xf32>
    %c0_12 = arith.constant 0 : index
    %c0_13 = arith.constant 0 : index
    %24 = vector.load %arg6[%c0_12, %c0_13] : memref<4x128xf32, #tpu.memory_space<vmem>>, vector<4x32xf32>
    tpu.vector_store %arg6[%c0_12, %c0_13], %23 {strides = array<i32>} : memref<4x128xf32, #tpu.memory_space<vmem>>, vector<4x32xf32>,
    %25 = vector.extract_strided_slice %1 {offsets = [0, 32], sizes = [4, 32], strides = [1, 1]} : vector<4x128xbf16> to vector<4x32xbf16>
    %cst_14 = arith.constant 1.767580e-01 : bf16
    %26 = vector.broadcast %cst_14 : bf16 to vector<4x32xbf16>
    %27 = arith.mulf %25, %26 : vector<4x32xbf16>
    %28 = vector.extract_strided_slice %3 {offsets = [0, 32], sizes = [4, 32], strides = [1, 1]} : vector<4x128xbf16> to vector<4x32xbf16>
    %29 = vector.extract_strided_slice %5 {offsets = [0, 32], sizes = [4, 32], strides = [1, 1]} : vector<4x128xbf16> to vector<4x32xbf16>
    %cst_15 = arith.constant dense<0.000000e+00> : vector<4x4xf32>
    %30 = tpu.matmul %27, %28, %cst_15 {dimension_numbers = #tpu.dot_dimension_numbers<[1], [1], [0], [0], [0, 0, 1, 0], [], []>} : vector<4x32xbf16>, vector<4x32xbf16>, vector<4x4xf32> -> vector<4x4xf32>
    %cst_16 = arith.constant dense<0xFF800000> : vector<4xf32>
    %31 = vector.multi_reduction <maximumf>, %30, %cst_16 [1] : vector<4x4xf32> to vector<4xf32>
    %32 = vector.shape_cast %31 : vector<4xf32> to vector<4x1xf32>
    %33 = vector.broadcast %32 : vector<4x1xf32> to vector<4x4xf32>
    %34 = arith.subf %30, %33 : vector<4x4xf32>
    %35 = math.exp %34 : vector<4x4xf32>
    %cst_17 = arith.constant dense<0.000000e+00> : vector<4xf32>
    %36 = vector.multi_reduction <add>, %35, %cst_17 [1] : vector<4x4xf32> to vector<4xf32>
    %37 = vector.shape_cast %36 : vector<4xf32> to vector<4x1xf32>
    %38 = tpu.reciprocal %37 {approx = true} : vector<4x1xf32> -> vector<4x1xf32>
    %39 = vector.broadcast %38 : vector<4x1xf32> to vector<4x4xf32>
    %40 = arith.mulf %35, %39 : vector<4x4xf32>
    %41 = arith.truncf %40 : vector<4x4xf32> to vector<4x4xbf16>
    %cst_18 = arith.constant dense<0.000000e+00> : vector<4x32xf32>
    %42 = tpu.matmul %41, %29, %cst_18 {dimension_numbers = #tpu.dot_dimension_numbers<[1], [0], [0], [1], [0, 0, 1, 1], [], []>} : vector<4x4xbf16>, vector<4x32xbf16>, vector<4x32xf32> -> vector<4x32xf32>
    %c0_19 = arith.constant 0 : index
    %c32 = arith.constant 32 : index
    %43 = vector.load %arg6[%c0_19, %c32] : memref<4x128xf32, #tpu.memory_space<vmem>>, vector<4x32xf32>
    tpu.vector_store %arg6[%c0_19, %c32], %42 {strides = array<i32>} : memref<4x128xf32, #tpu.memory_space<vmem>>, vector<4x32xf32>,
    %44 = vector.extract_strided_slice %1 {offsets = [0, 64], sizes = [4, 32], strides = [1, 1]} : vector<4x128xbf16> to vector<4x32xbf16>
    %cst_20 = arith.constant 1.767580e-01 : bf16
    %45 = vector.broadcast %cst_20 : bf16 to vector<4x32xbf16>
    %46 = arith.mulf %44, %45 : vector<4x32xbf16>
    %47 = vector.extract_strided_slice %3 {offsets = [0, 64], sizes = [4, 32], strides = [1, 1]} : vector<4x128xbf16> to vector<4x32xbf16>
    %48 = vector.extract_strided_slice %5 {offsets = [0, 64], sizes = [4, 32], strides = [1, 1]} : vector<4x128xbf16> to vector<4x32xbf16>
    %cst_21 = arith.constant dense<0.000000e+00> : vector<4x4xf32>
    %49 = tpu.matmul %46, %47, %cst_21 {dimension_numbers = #tpu.dot_dimension_numbers<[1], [1], [0], [0], [0, 0, 1, 0], [], []>} : vector<4x32xbf16>, vector<4x32xbf16>, vector<4x4xf32> -> vector<4x4xf32>
    %cst_22 = arith.constant dense<0xFF800000> : vector<4xf32>
    %50 = vector.multi_reduction <maximumf>, %49, %cst_22 [1] : vector<4x4xf32> to vector<4xf32>
    %51 = vector.shape_cast %50 : vector<4xf32> to vector<4x1xf32>
    %52 = vector.broadcast %51 : vector<4x1xf32> to vector<4x4xf32>
    %53 = arith.subf %49, %52 : vector<4x4xf32>
    %54 = math.exp %53 : vector<4x4xf32>
    %cst_23 = arith.constant dense<0.000000e+00> : vector<4xf32>
    %55 = vector.multi_reduction <add>, %54, %cst_23 [1] : vector<4x4xf32> to vector<4xf32>
    %56 = vector.shape_cast %55 : vector<4xf32> to vector<4x1xf32>
    %57 = tpu.reciprocal %56 {approx = true} : vector<4x1xf32> -> vector<4x1xf32>
    %58 = vector.broadcast %57 : vector<4x1xf32> to vector<4x4xf32>
    %59 = arith.mulf %54, %58 : vector<4x4xf32>
    %60 = arith.truncf %59 : vector<4x4xf32> to vector<4x4xbf16>
    %cst_24 = arith.constant dense<0.000000e+00> : vector<4x32xf32>
    %61 = tpu.matmul %60, %48, %cst_24 {dimension_numbers = #tpu.dot_dimension_numbers<[1], [0], [0], [1], [0, 0, 1, 1], [], []>} : vector<4x4xbf16>, vector<4x32xbf16>, vector<4x32xf32> -> vector<4x32xf32>
    %c0_25 = arith.constant 0 : index
    %c64 = arith.constant 64 : index
    %62 = vector.load %arg6[%c0_25, %c64] : memref<4x128xf32, #tpu.memory_space<vmem>>, vector<4x32xf32>
    tpu.vector_store %arg6[%c0_25, %c64], %61 {strides = array<i32>} : memref<4x128xf32, #tpu.memory_space<vmem>>, vector<4x32xf32>,
    %63 = vector.extract_strided_slice %1 {offsets = [0, 96], sizes = [4, 32], strides = [1, 1]} : vector<4x128xbf16> to vector<4x32xbf16>
    %cst_26 = arith.constant 1.767580e-01 : bf16
    %64 = vector.broadcast %cst_26 : bf16 to vector<4x32xbf16>
    %65 = arith.mulf %63, %64 : vector<4x32xbf16>
    %66 = vector.extract_strided_slice %3 {offsets = [0, 96], sizes = [4, 32], strides = [1, 1]} : vector<4x128xbf16> to vector<4x32xbf16>
    %67 = vector.extract_strided_slice %5 {offsets = [0, 96], sizes = [4, 32], strides = [1, 1]} : vector<4x128xbf16> to vector<4x32xbf16>
    %cst_27 = arith.constant dense<0.000000e+00> : vector<4x4xf32>
    %68 = tpu.matmul %65, %66, %cst_27 {dimension_numbers = #tpu.dot_dimension_numbers<[1], [1], [0], [0], [0, 0, 1, 0], [], []>} : vector<4x32xbf16>, vector<4x32xbf16>, vector<4x4xf32> -> vector<4x4xf32>
    %cst_28 = arith.constant dense<0xFF800000> : vector<4xf32>
    %69 = vector.multi_reduction <maximumf>, %68, %cst_28 [1] : vector<4x4xf32> to vector<4xf32>
    %70 = vector.shape_cast %69 : vector<4xf32> to vector<4x1xf32>
    %71 = vector.broadcast %70 : vector<4x1xf32> to vector<4x4xf32>
    %72 = arith.subf %68, %71 : vector<4x4xf32>
    %73 = math.exp %72 : vector<4x4xf32>
    %cst_29 = arith.constant dense<0.000000e+00> : vector<4xf32>
    %74 = vector.multi_reduction <add>, %73, %cst_29 [1] : vector<4x4xf32> to vector<4xf32>
    %75 = vector.shape_cast %74 : vector<4xf32> to vector<4x1xf32>
    %76 = tpu.reciprocal %75 {approx = true} : vector<4x1xf32> -> vector<4x1xf32>
    %77 = vector.broadcast %76 : vector<4x1xf32> to vector<4x4xf32>
    %78 = arith.mulf %73, %77 : vector<4x4xf32>
    %79 = arith.truncf %78 : vector<4x4xf32> to vector<4x4xbf16>
    %cst_30 = arith.constant dense<0.000000e+00> : vector<4x32xf32>
    %80 = tpu.matmul %79, %67, %cst_30 {dimension_numbers = #tpu.dot_dimension_numbers<[1], [0], [0], [1], [0, 0, 1, 1], [], []>} : vector<4x4xbf16>, vector<4x32xbf16>, vector<4x32xf32> -> vector<4x32xf32>
    %c0_31 = arith.constant 0 : index
    %c96 = arith.constant 96 : index
    %81 = vector.load %arg6[%c0_31, %c96] : memref<4x128xf32, #tpu.memory_space<vmem>>, vector<4x32xf32>
    tpu.vector_store %arg6[%c0_31, %c96], %80 {strides = array<i32>} : memref<4x128xf32, #tpu.memory_space<vmem>>, vector<4x32xf32>,
    %c0_32 = arith.constant 0 : index
    %c0_33 = arith.constant 0 : index
    %82 = vector.load %arg6[%c0_32, %c0_33] : memref<4x128xf32, #tpu.memory_space<vmem>>, vector<4x128xf32>
    %83 = arith.truncf %82 : vector<4x128xf32> to vector<4x128xbf16>
    %c0_34 = arith.constant 0 : index
    %c0_35 = arith.constant 0 : index
    %c0_36 = arith.constant 0 : index
    %84 = vector.load %arg5[%c0_34, %c0_35, %c0_36] : memref<1x4x128xbf16, #tpu.memory_space<vmem>>, vector<1x4x128xbf16>
    %85 = vector.shape_cast %84 : vector<1x4x128xbf16> to vector<4x128xbf16>
    %86 = vector.shape_cast %83 : vector<4x128xbf16> to vector<1x4x128xbf16>
    tpu.vector_store %arg5[%c0_34, %c0_35, %c0_36], %86 {strides = array<i32>} : memref<1x4x128xbf16, #tpu.memory_space<vmem>>, vector<1x4x128xbf16>,
    return
  }
  func.func @transform_0(%arg0: i32, %arg1: i32) -> (i32, i32, i32) {
    %c0_i32 = arith.constant 0 : i32
    %c0_i32_0 = arith.constant 0 : i32
    return %arg0, %arg1, %c0_i32 : i32, i32, i32
  }
  func.func @transform_1(%arg0: i32, %arg1: i32) -> (i32, i32, i32) {
    %c0_i32 = arith.constant 0 : i32
    %c1_i32 = arith.constant 1 : i32
    %c0_i32_0 = arith.constant 0 : i32
    return %arg0, %c0_i32, %c1_i32 : i32, i32, i32
  }
  func.func @transform_2(%arg0: i32, %arg1: i32) -> (i32, i32, i32) {
    %c0_i32 = arith.constant 0 : i32
    %c2_i32 = arith.constant 2 : i32
    %c0_i32_0 = arith.constant 0 : i32
    return %arg0, %c0_i32, %c2_i32 : i32, i32, i32
  }
  func.func @transform_3(%arg0: i32, %arg1: i32) -> (i32, i32, i32) {
    %c0_i32 = arith.constant 0 : i32
    %c0_i32_0 = arith.constant 0 : i32
    return %arg0, %arg1, %c0_i32 : i32, i32, i32
  }
}

module attributes {stable_mosaic.version = 11 : i64} {
  func.func @_mm_kernel(%arg0: i32, %arg1: i32, %arg2: i32, %arg3: memref<8x128xf32, #tpu.memory_space<vmem>>, %arg4: memref<128x384xbf16, #tpu.memory_space<vmem>>, %arg5: memref<1x128xf32, #tpu.memory_space<vmem>>, %arg6: memref<1x128xf32, #tpu.memory_space<vmem>>, %arg7: memref<8x384xbf16, #tpu.memory_space<vmem>>, %arg8: memref<8x384xf32, #tpu.memory_space<vmem>>) attributes {dimension_semantics = [#tpu.dimension_semantics<parallel>, #tpu.dimension_semantics<parallel>, #tpu.dimension_semantics<arbitrary>], iteration_bounds = array<i64: 1, 1, 1>, scalar_prefetch = 0 : i64, scratch_operands = 1 : i64, tpu.core_type = #tpu.core_type<tc>, window_params = [{transform_indices = @transform_0, window_bounds = array<i64: 8, 128>}, {transform_indices = @transform_1, window_bounds = array<i64: 128, 384>}, {pipeline_mode = #tpu.pipeline_mode<synchronous>, transform_indices = @transform_2, window_bounds = array<i64: 1, 128>}, {pipeline_mode = #tpu.pipeline_mode<synchronous>, transform_indices = @transform_3, window_bounds = array<i64: 1, 128>}, {transform_indices = @transform_4, window_bounds = array<i64: 8, 384>}]} {
    %c0_i32 = arith.constant 0 : i32
    %0 = arith.cmpi eq, %arg2, %c0_i32 : i32
    %1 = arith.extui %0 : i1 to i32
    %c0_i32_0 = arith.constant 0 : i32
    %2 = arith.cmpi ne, %1, %c0_i32_0 : i32
    scf.if %2 {
      %cst_19 = arith.constant 0.000000e+00 : f32
      %37 = vector.broadcast %cst_19 : f32 to vector<8x384xf32>
      %c0_20 = arith.constant 0 : index
      %c0_21 = arith.constant 0 : index
      %38 = vector.load %arg8[%c0_20, %c0_21] : memref<8x384xf32, #tpu.memory_space<vmem>>, vector<8x384xf32>
      tpu.vector_store %arg8[%c0_20, %c0_21], %37 {strides = array<i32>} : memref<8x384xf32, #tpu.memory_space<vmem>>, vector<8x384xf32>,
    } else {
    }
    %c0 = arith.constant 0 : index
    %c0_1 = arith.constant 0 : index
    %3 = vector.load %arg3[%c0, %c0_1] : memref<8x128xf32, #tpu.memory_space<vmem>>, vector<8x128xf32>
    %cst = arith.constant dense<0.000000e+00> : vector<8xf32>
    %4 = vector.multi_reduction <add>, %3, %cst [1] : vector<8x128xf32> to vector<8xf32>
    %5 = vector.shape_cast %4 : vector<8xf32> to vector<8x1xf32>
    %cst_2 = arith.constant 1.280000e+02 : f32
    %6 = vector.broadcast %cst_2 : f32 to vector<8x1xf32>
    %7 = arith.divf %5, %6 : vector<8x1xf32>
    %8 = vector.broadcast %7 : vector<8x1xf32> to vector<8x128xf32>
    %9 = arith.subf %3, %8 : vector<8x128xf32>
    %10 = arith.mulf %9, %9 : vector<8x128xf32>
    %cst_3 = arith.constant dense<0.000000e+00> : vector<8xf32>
    %11 = vector.multi_reduction <add>, %10, %cst_3 [1] : vector<8x128xf32> to vector<8xf32>
    %12 = vector.shape_cast %11 : vector<8xf32> to vector<8x1xf32>
    %cst_4 = arith.constant 1.280000e+02 : f32
    %13 = vector.broadcast %cst_4 : f32 to vector<8x1xf32>
    %14 = arith.divf %12, %13 : vector<8x1xf32>
    %15 = vector.broadcast %7 : vector<8x1xf32> to vector<8x128xf32>
    %16 = arith.subf %3, %15 : vector<8x128xf32>
    %cst_5 = arith.constant 9.99999974E-6 : f32
    %17 = vector.broadcast %cst_5 : f32 to vector<8x1xf32>
    %18 = arith.addf %14, %17 : vector<8x1xf32>
    %19 = math.rsqrt %18 : vector<8x1xf32>
    %20 = vector.broadcast %19 : vector<8x1xf32> to vector<8x128xf32>
    %21 = arith.mulf %16, %20 : vector<8x128xf32>
    %c0_6 = arith.constant 0 : index
    %c0_7 = arith.constant 0 : index
    %22 = vector.load %arg5[%c0_6, %c0_7] : memref<1x128xf32, #tpu.memory_space<vmem>>, vector<1x128xf32>
    %23 = vector.broadcast %22 : vector<1x128xf32> to vector<8x128xf32>
    %24 = arith.mulf %21, %23 : vector<8x128xf32>
    %c0_8 = arith.constant 0 : index
    %c0_9 = arith.constant 0 : index
    %25 = vector.load %arg6[%c0_8, %c0_9] : memref<1x128xf32, #tpu.memory_space<vmem>>, vector<1x128xf32>
    %26 = vector.broadcast %25 : vector<1x128xf32> to vector<8x128xf32>
    %27 = arith.addf %24, %26 : vector<8x128xf32>
    %28 = arith.truncf %27 : vector<8x128xf32> to vector<8x128xbf16>
    %c0_10 = arith.constant 0 : index
    %c0_11 = arith.constant 0 : index
    %29 = vector.load %arg8[%c0_10, %c0_11] : memref<8x384xf32, #tpu.memory_space<vmem>>, vector<8x384xf32>
    %c0_12 = arith.constant 0 : index
    %c0_13 = arith.constant 0 : index
    %30 = vector.load %arg4[%c0_12, %c0_13] : memref<128x384xbf16, #tpu.memory_space<vmem>>, vector<128x384xbf16>
    %cst_14 = arith.constant dense<0.000000e+00> : vector<8x384xf32>
    %31 = tpu.matmul %28, %30, %cst_14 {dimension_numbers = #tpu.dot_dimension_numbers<[1], [0], [0], [1], [0, 0, 1, 1], [], []>} : vector<8x128xbf16>, vector<128x384xbf16>, vector<8x384xf32> -> vector<8x384xf32>
    %32 = arith.addf %29, %31 : vector<8x384xf32>
    %c0_15 = arith.constant 0 : index
    %c0_16 = arith.constant 0 : index
    %33 = vector.load %arg8[%c0_15, %c0_16] : memref<8x384xf32, #tpu.memory_space<vmem>>, vector<8x384xf32>
    tpu.vector_store %arg8[%c0_15, %c0_16], %32 {strides = array<i32>} : memref<8x384xf32, #tpu.memory_space<vmem>>, vector<8x384xf32>,
    %c0_i32_17 = arith.constant 0 : i32
    %34 = arith.cmpi eq, %arg2, %c0_i32_17 : i32
    %35 = arith.extui %34 : i1 to i32
    %c0_i32_18 = arith.constant 0 : i32
    %36 = arith.cmpi ne, %35, %c0_i32_18 : i32
    scf.if %36 {
      %c0_19 = arith.constant 0 : index
      %c0_20 = arith.constant 0 : index
      %37 = vector.load %arg8[%c0_19, %c0_20] : memref<8x384xf32, #tpu.memory_space<vmem>>, vector<8x384xf32>
      %38 = arith.truncf %37 : vector<8x384xf32> to vector<8x384xbf16>
      %c0_21 = arith.constant 0 : index
      %c0_22 = arith.constant 0 : index
      %39 = vector.load %arg7[%c0_21, %c0_22] : memref<8x384xbf16, #tpu.memory_space<vmem>>, vector<8x384xbf16>
      tpu.vector_store %arg7[%c0_21, %c0_22], %38 {strides = array<i32>} : memref<8x384xbf16, #tpu.memory_space<vmem>>, vector<8x384xbf16>,
    } else {
    }
    return
  }
  func.func @transform_0(%arg0: i32, %arg1: i32, %arg2: i32) -> (i32, i32) {
    %c0_i32 = arith.constant 0 : i32
    return %arg0, %arg2 : i32, i32
  }
  func.func @transform_1(%arg0: i32, %arg1: i32, %arg2: i32) -> (i32, i32) {
    %c0_i32 = arith.constant 0 : i32
    return %arg2, %arg1 : i32, i32
  }
  func.func @transform_2(%arg0: i32, %arg1: i32, %arg2: i32) -> (i32, i32) {
    %c0_i32 = arith.constant 0 : i32
    %c0_i32_0 = arith.constant 0 : i32
    %c0_i32_1 = arith.constant 0 : i32
    return %c0_i32, %c0_i32_0 : i32, i32
  }
  func.func @transform_3(%arg0: i32, %arg1: i32, %arg2: i32) -> (i32, i32) {
    %c0_i32 = arith.constant 0 : i32
    %c0_i32_0 = arith.constant 0 : i32
    %c0_i32_1 = arith.constant 0 : i32
    return %c0_i32, %c0_i32_0 : i32, i32
  }
  func.func @transform_4(%arg0: i32, %arg1: i32, %arg2: i32) -> (i32, i32) {
    %c0_i32 = arith.constant 0 : i32
    return %arg0, %arg1 : i32, i32
  }
}

module attributes {stable_mosaic.version = 11 : i64} {
  func.func @_mm_kernel(%arg0: i32, %arg1: i32, %arg2: i32, %arg3: memref<8x128xbf16, #tpu.memory_space<vmem>>, %arg4: memref<128x128xbf16, #tpu.memory_space<vmem>>, %arg5: memref<1x128xf32, #tpu.memory_space<vmem>>, %arg6: memref<8x128xf32, #tpu.memory_space<vmem>>, %arg7: memref<8x128xf32, #tpu.memory_space<vmem>>, %arg8: memref<8x128xf32, #tpu.memory_space<vmem>>) attributes {dimension_semantics = [#tpu.dimension_semantics<parallel>, #tpu.dimension_semantics<parallel>, #tpu.dimension_semantics<arbitrary>], iteration_bounds = array<i64: 1, 1, 1>, scalar_prefetch = 0 : i64, scratch_operands = 1 : i64, tpu.core_type = #tpu.core_type<tc>, window_params = [{transform_indices = @transform_0, window_bounds = array<i64: 8, 128>}, {transform_indices = @transform_1, window_bounds = array<i64: 128, 128>}, {transform_indices = @transform_2, window_bounds = array<i64: 1, 128>}, {transform_indices = @transform_3, window_bounds = array<i64: 8, 128>}, {transform_indices = @transform_4, window_bounds = array<i64: 8, 128>}]} {
    %c0_i32 = arith.constant 0 : i32
    %0 = arith.cmpi eq, %arg2, %c0_i32 : i32
    %1 = arith.extui %0 : i1 to i32
    %c0_i32_0 = arith.constant 0 : i32
    %2 = arith.cmpi ne, %1, %c0_i32_0 : i32
    scf.if %2 {
      %cst_10 = arith.constant 0.000000e+00 : f32
      %12 = vector.broadcast %cst_10 : f32 to vector<8x128xf32>
      %c0_11 = arith.constant 0 : index
      %c0_12 = arith.constant 0 : index
      %13 = vector.load %arg8[%c0_11, %c0_12] : memref<8x128xf32, #tpu.memory_space<vmem>>, vector<8x128xf32>
      tpu.vector_store %arg8[%c0_11, %c0_12], %12 {strides = array<i32>} : memref<8x128xf32, #tpu.memory_space<vmem>>, vector<8x128xf32>,
    } else {
    }
    %c0 = arith.constant 0 : index
    %c0_1 = arith.constant 0 : index
    %3 = vector.load %arg3[%c0, %c0_1] : memref<8x128xbf16, #tpu.memory_space<vmem>>, vector<8x128xbf16>
    %c0_2 = arith.constant 0 : index
    %c0_3 = arith.constant 0 : index
    %4 = vector.load %arg8[%c0_2, %c0_3] : memref<8x128xf32, #tpu.memory_space<vmem>>, vector<8x128xf32>
    %c0_4 = arith.constant 0 : index
    %c0_5 = arith.constant 0 : index
    %5 = vector.load %arg4[%c0_4, %c0_5] : memref<128x128xbf16, #tpu.memory_space<vmem>>, vector<128x128xbf16>
    %cst = arith.constant dense<0.000000e+00> : vector<8x128xf32>
    %6 = tpu.matmul %3, %5, %cst {dimension_numbers = #tpu.dot_dimension_numbers<[1], [0], [0], [1], [0, 0, 1, 1], [], []>} : vector<8x128xbf16>, vector<128x128xbf16>, vector<8x128xf32> -> vector<8x128xf32>
    %7 = arith.addf %4, %6 : vector<8x128xf32>
    %c0_6 = arith.constant 0 : index
    %c0_7 = arith.constant 0 : index
    %8 = vector.load %arg8[%c0_6, %c0_7] : memref<8x128xf32, #tpu.memory_space<vmem>>, vector<8x128xf32>
    tpu.vector_store %arg8[%c0_6, %c0_7], %7 {strides = array<i32>} : memref<8x128xf32, #tpu.memory_space<vmem>>, vector<8x128xf32>,
    %c0_i32_8 = arith.constant 0 : i32
    %9 = arith.cmpi eq, %arg2, %c0_i32_8 : i32
    %10 = arith.extui %9 : i1 to i32
    %c0_i32_9 = arith.constant 0 : i32
    %11 = arith.cmpi ne, %10, %c0_i32_9 : i32
    scf.if %11 {
      %c0_10 = arith.constant 0 : index
      %c0_11 = arith.constant 0 : index
      %12 = vector.load %arg8[%c0_10, %c0_11] : memref<8x128xf32, #tpu.memory_space<vmem>>, vector<8x128xf32>
      %c0_12 = arith.constant 0 : index
      %c0_13 = arith.constant 0 : index
      %13 = vector.load %arg5[%c0_12, %c0_13] : memref<1x128xf32, #tpu.memory_space<vmem>>, vector<1x128xf32>
      %14 = vector.broadcast %13 : vector<1x128xf32> to vector<8x128xf32>
      %15 = arith.addf %12, %14 : vector<8x128xf32>
      %c0_14 = arith.constant 0 : index
      %c0_15 = arith.constant 0 : index
      %16 = vector.load %arg6[%c0_14, %c0_15] : memref<8x128xf32, #tpu.memory_space<vmem>>, vector<8x128xf32>
      %17 = arith.addf %15, %16 : vector<8x128xf32>
      %c0_16 = arith.constant 0 : index
      %c0_17 = arith.constant 0 : index
      %18 = vector.load %arg7[%c0_16, %c0_17] : memref<8x128xf32, #tpu.memory_space<vmem>>, vector<8x128xf32>
      tpu.vector_store %arg7[%c0_16, %c0_17], %17 {strides = array<i32>} : memref<8x128xf32, #tpu.memory_space<vmem>>, vector<8x128xf32>,
    } else {
    }
    return
  }
  func.func @transform_0(%arg0: i32, %arg1: i32, %arg2: i32) -> (i32, i32) {
    %c0_i32 = arith.constant 0 : i32
    return %arg0, %arg2 : i32, i32
  }
  func.func @transform_1(%arg0: i32, %arg1: i32, %arg2: i32) -> (i32, i32) {
    %c0_i32 = arith.constant 0 : i32
    return %arg2, %arg1 : i32, i32
  }
  func.func @transform_2(%arg0: i32, %arg1: i32, %arg2: i32) -> (i32, i32) {
    %c0_i32 = arith.constant 0 : i32
    %c0_i32_0 = arith.constant 0 : i32
    return %c0_i32, %arg1 : i32, i32
  }
  func.func @transform_3(%arg0: i32, %arg1: i32, %arg2: i32) -> (i32, i32) {
    %c0_i32 = arith.constant 0 : i32
    return %arg0, %arg1 : i32, i32
  }
  func.func @transform_4(%arg0: i32, %arg1: i32, %arg2: i32) -> (i32, i32) {
    %c0_i32 = arith.constant 0 : i32
    return %arg0, %arg1 : i32, i32
  }
}

module attributes {stable_mosaic.version = 11 : i64} {
  func.func @_mm_kernel(%arg0: i32, %arg1: i32, %arg2: i32, %arg3: memref<8x128xf32, #tpu.memory_space<vmem>>, %arg4: memref<128x512xbf16, #tpu.memory_space<vmem>>, %arg5: memref<1x128xf32, #tpu.memory_space<vmem>>, %arg6: memref<1x128xf32, #tpu.memory_space<vmem>>, %arg7: memref<1x512xf32, #tpu.memory_space<vmem>>, %arg8: memref<8x512xbf16, #tpu.memory_space<vmem>>, %arg9: memref<8x512xf32, #tpu.memory_space<vmem>>) attributes {dimension_semantics = [#tpu.dimension_semantics<parallel>, #tpu.dimension_semantics<parallel>, #tpu.dimension_semantics<arbitrary>], iteration_bounds = array<i64: 1, 1, 1>, scalar_prefetch = 0 : i64, scratch_operands = 1 : i64, tpu.core_type = #tpu.core_type<tc>, window_params = [{transform_indices = @transform_0, window_bounds = array<i64: 8, 128>}, {transform_indices = @transform_1, window_bounds = array<i64: 128, 512>}, {pipeline_mode = #tpu.pipeline_mode<synchronous>, transform_indices = @transform_2, window_bounds = array<i64: 1, 128>}, {pipeline_mode = #tpu.pipeline_mode<synchronous>, transform_indices = @transform_3, window_bounds = array<i64: 1, 128>}, {transform_indices = @transform_4, window_bounds = array<i64: 1, 512>}, {transform_indices = @transform_5, window_bounds = array<i64: 8, 512>}]} {
    %c0_i32 = arith.constant 0 : i32
    %0 = arith.cmpi eq, %arg2, %c0_i32 : i32
    %1 = arith.extui %0 : i1 to i32
    %c0_i32_0 = arith.constant 0 : i32
    %2 = arith.cmpi ne, %1, %c0_i32_0 : i32
    scf.if %2 {
      %cst_19 = arith.constant 0.000000e+00 : f32
      %37 = vector.broadcast %cst_19 : f32 to vector<8x512xf32>
      %c0_20 = arith.constant 0 : index
      %c0_21 = arith.constant 0 : index
      %38 = vector.load %arg9[%c0_20, %c0_21] : memref<8x512xf32, #tpu.memory_space<vmem>>, vector<8x512xf32>
      tpu.vector_store %arg9[%c0_20, %c0_21], %37 {strides = array<i32>} : memref<8x512xf32, #tpu.memory_space<vmem>>, vector<8x512xf32>,
    } else {
    }
    %c0 = arith.constant 0 : index
    %c0_1 = arith.constant 0 : index
    %3 = vector.load %arg3[%c0, %c0_1] : memref<8x128xf32, #tpu.memory_space<vmem>>, vector<8x128xf32>
    %cst = arith.constant dense<0.000000e+00> : vector<8xf32>
    %4 = vector.multi_reduction <add>, %3, %cst [1] : vector<8x128xf32> to vector<8xf32>
    %5 = vector.shape_cast %4 : vector<8xf32> to vector<8x1xf32>
    %cst_2 = arith.constant 1.280000e+02 : f32
    %6 = vector.broadcast %cst_2 : f32 to vector<8x1xf32>
    %7 = arith.divf %5, %6 : vector<8x1xf32>
    %8 = vector.broadcast %7 : vector<8x1xf32> to vector<8x128xf32>
    %9 = arith.subf %3, %8 : vector<8x128xf32>
    %10 = arith.mulf %9, %9 : vector<8x128xf32>
    %cst_3 = arith.constant dense<0.000000e+00> : vector<8xf32>
    %11 = vector.multi_reduction <add>, %10, %cst_3 [1] : vector<8x128xf32> to vector<8xf32>
    %12 = vector.shape_cast %11 : vector<8xf32> to vector<8x1xf32>
    %cst_4 = arith.constant 1.280000e+02 : f32
    %13 = vector.broadcast %cst_4 : f32 to vector<8x1xf32>
    %14 = arith.divf %12, %13 : vector<8x1xf32>
    %15 = vector.broadcast %7 : vector<8x1xf32> to vector<8x128xf32>
    %16 = arith.subf %3, %15 : vector<8x128xf32>
    %cst_5 = arith.constant 9.99999974E-6 : f32
    %17 = vector.broadcast %cst_5 : f32 to vector<8x1xf32>
    %18 = arith.addf %14, %17 : vector<8x1xf32>
    %19 = math.rsqrt %18 : vector<8x1xf32>
    %20 = vector.broadcast %19 : vector<8x1xf32> to vector<8x128xf32>
    %21 = arith.mulf %16, %20 : vector<8x128xf32>
    %c0_6 = arith.constant 0 : index
    %c0_7 = arith.constant 0 : index
    %22 = vector.load %arg5[%c0_6, %c0_7] : memref<1x128xf32, #tpu.memory_space<vmem>>, vector<1x128xf32>
    %23 = vector.broadcast %22 : vector<1x128xf32> to vector<8x128xf32>
    %24 = arith.mulf %21, %23 : vector<8x128xf32>
    %c0_8 = arith.constant 0 : index
    %c0_9 = arith.constant 0 : index
    %25 = vector.load %arg6[%c0_8, %c0_9] : memref<1x128xf32, #tpu.memory_space<vmem>>, vector<1x128xf32>
    %26 = vector.broadcast %25 : vector<1x128xf32> to vector<8x128xf32>
    %27 = arith.addf %24, %26 : vector<8x128xf32>
    %28 = arith.truncf %27 : vector<8x128xf32> to vector<8x128xbf16>
    %c0_10 = arith.constant 0 : index
    %c0_11 = arith.constant 0 : index
    %29 = vector.load %arg9[%c0_10, %c0_11] : memref<8x512xf32, #tpu.memory_space<vmem>>, vector<8x512xf32>
    %c0_12 = arith.constant 0 : index
    %c0_13 = arith.constant 0 : index
    %30 = vector.load %arg4[%c0_12, %c0_13] : memref<128x512xbf16, #tpu.memory_space<vmem>>, vector<128x512xbf16>
    %cst_14 = arith.constant dense<0.000000e+00> : vector<8x512xf32>
    %31 = tpu.matmul %28, %30, %cst_14 {dimension_numbers = #tpu.dot_dimension_numbers<[1], [0], [0], [1], [0, 0, 1, 1], [], []>} : vector<8x128xbf16>, vector<128x512xbf16>, vector<8x512xf32> -> vector<8x512xf32>
    %32 = arith.addf %29, %31 : vector<8x512xf32>
    %c0_15 = arith.constant 0 : index
    %c0_16 = arith.constant 0 : index
    %33 = vector.load %arg9[%c0_15, %c0_16] : memref<8x512xf32, #tpu.memory_space<vmem>>, vector<8x512xf32>
    tpu.vector_store %arg9[%c0_15, %c0_16], %32 {strides = array<i32>} : memref<8x512xf32, #tpu.memory_space<vmem>>, vector<8x512xf32>,
    %c0_i32_17 = arith.constant 0 : i32
    %34 = arith.cmpi eq, %arg2, %c0_i32_17 : i32
    %35 = arith.extui %34 : i1 to i32
    %c0_i32_18 = arith.constant 0 : i32
    %36 = arith.cmpi ne, %35, %c0_i32_18 : i32
    scf.if %36 {
      %c0_19 = arith.constant 0 : index
      %c0_20 = arith.constant 0 : index
      %37 = vector.load %arg9[%c0_19, %c0_20] : memref<8x512xf32, #tpu.memory_space<vmem>>, vector<8x512xf32>
      %c0_21 = arith.constant 0 : index
      %c0_22 = arith.constant 0 : index
      %38 = vector.load %arg7[%c0_21, %c0_22] : memref<1x512xf32, #tpu.memory_space<vmem>>, vector<1x512xf32>
      %39 = vector.broadcast %38 : vector<1x512xf32> to vector<8x512xf32>
      %40 = arith.addf %37, %39 : vector<8x512xf32>
      %cst_23 = arith.constant 5.000000e-01 : f32
      %41 = vector.broadcast %cst_23 : f32 to vector<8x512xf32>
      %42 = arith.mulf %41, %40 : vector<8x512xf32>
      %cst_24 = arith.constant 4.471500e-02 : f32
      %43 = vector.broadcast %cst_24 : f32 to vector<8x512xf32>
      %44 = arith.mulf %43, %40 : vector<8x512xf32>
      %45 = arith.mulf %44, %40 : vector<8x512xf32>
      %46 = arith.mulf %45, %40 : vector<8x512xf32>
      %47 = arith.addf %40, %46 : vector<8x512xf32>
      %cst_25 = arith.constant 0.797884583 : f32
      %48 = vector.broadcast %cst_25 : f32 to vector<8x512xf32>
      %49 = arith.mulf %48, %47 : vector<8x512xf32>
      %50 = math.tanh %49 : vector<8x512xf32>
      %cst_26 = arith.constant 1.000000e+00 : f32
      %51 = vector.broadcast %cst_26 : f32 to vector<8x512xf32>
      %52 = arith.addf %51, %50 : vector<8x512xf32>
      %53 = arith.mulf %42, %52 : vector<8x512xf32>
      %54 = arith.truncf %53 : vector<8x512xf32> to vector<8x512xbf16>
      %c0_27 = arith.constant 0 : index
      %c0_28 = arith.constant 0 : index
      %55 = vector.load %arg8[%c0_27, %c0_28] : memref<8x512xbf16, #tpu.memory_space<vmem>>, vector<8x512xbf16>
      tpu.vector_store %arg8[%c0_27, %c0_28], %54 {strides = array<i32>} : memref<8x512xbf16, #tpu.memory_space<vmem>>, vector<8x512xbf16>,
    } else {
    }
    return
  }
  func.func @transform_0(%arg0: i32, %arg1: i32, %arg2: i32) -> (i32, i32) {
    %c0_i32 = arith.constant 0 : i32
    return %arg0, %arg2 : i32, i32
  }
  func.func @transform_1(%arg0: i32, %arg1: i32, %arg2: i32) -> (i32, i32) {
    %c0_i32 = arith.constant 0 : i32
    return %arg2, %arg1 : i32, i32
  }
  func.func @transform_2(%arg0: i32, %arg1: i32, %arg2: i32) -> (i32, i32) {
    %c0_i32 = arith.constant 0 : i32
    %c0_i32_0 = arith.constant 0 : i32
    %c0_i32_1 = arith.constant 0 : i32
    return %c0_i32, %c0_i32_0 : i32, i32
  }
  func.func @transform_3(%arg0: i32, %arg1: i32, %arg2: i32) -> (i32, i32) {
    %c0_i32 = arith.constant 0 : i32
    %c0_i32_0 = arith.constant 0 : i32
    %c0_i32_1 = arith.constant 0 : i32
    return %c0_i32, %c0_i32_0 : i32, i32
  }
  func.func @transform_4(%arg0: i32, %arg1: i32, %arg2: i32) -> (i32, i32) {
    %c0_i32 = arith.constant 0 : i32
    %c0_i32_0 = arith.constant 0 : i32
    return %c0_i32, %arg1 : i32, i32
  }
  func.func @transform_5(%arg0: i32, %arg1: i32, %arg2: i32) -> (i32, i32) {
    %c0_i32 = arith.constant 0 : i32
    return %arg0, %arg1 : i32, i32
  }
}

module attributes {stable_mosaic.version = 11 : i64} {
  func.func @_mm_kernel(%arg0: i32, %arg1: i32, %arg2: i32, %arg3: memref<8x512xbf16, #tpu.memory_space<vmem>>, %arg4: memref<512x128xbf16, #tpu.memory_space<vmem>>, %arg5: memref<1x128xf32, #tpu.memory_space<vmem>>, %arg6: memref<8x128xf32, #tpu.memory_space<vmem>>, %arg7: memref<8x128xf32, #tpu.memory_space<vmem>>, %arg8: memref<8x128xf32, #tpu.memory_space<vmem>>) attributes {dimension_semantics = [#tpu.dimension_semantics<parallel>, #tpu.dimension_semantics<parallel>, #tpu.dimension_semantics<arbitrary>], iteration_bounds = array<i64: 1, 1, 1>, scalar_prefetch = 0 : i64, scratch_operands = 1 : i64, tpu.core_type = #tpu.core_type<tc>, window_params = [{transform_indices = @transform_0, window_bounds = array<i64: 8, 512>}, {transform_indices = @transform_1, window_bounds = array<i64: 512, 128>}, {transform_indices = @transform_2, window_bounds = array<i64: 1, 128>}, {transform_indices = @transform_3, window_bounds = array<i64: 8, 128>}, {transform_indices = @transform_4, window_bounds = array<i64: 8, 128>}]} {
    %c0_i32 = arith.constant 0 : i32
    %0 = arith.cmpi eq, %arg2, %c0_i32 : i32
    %1 = arith.extui %0 : i1 to i32
    %c0_i32_0 = arith.constant 0 : i32
    %2 = arith.cmpi ne, %1, %c0_i32_0 : i32
    scf.if %2 {
      %cst_10 = arith.constant 0.000000e+00 : f32
      %12 = vector.broadcast %cst_10 : f32 to vector<8x128xf32>
      %c0_11 = arith.constant 0 : index
      %c0_12 = arith.constant 0 : index
      %13 = vector.load %arg8[%c0_11, %c0_12] : memref<8x128xf32, #tpu.memory_space<vmem>>, vector<8x128xf32>
      tpu.vector_store %arg8[%c0_11, %c0_12], %12 {strides = array<i32>} : memref<8x128xf32, #tpu.memory_space<vmem>>, vector<8x128xf32>,
    } else {
    }
    %c0 = arith.constant 0 : index
    %c0_1 = arith.constant 0 : index
    %3 = vector.load %arg3[%c0, %c0_1] : memref<8x512xbf16, #tpu.memory_space<vmem>>, vector<8x512xbf16>
    %c0_2 = arith.constant 0 : index
    %c0_3 = arith.constant 0 : index
    %4 = vector.load %arg8[%c0_2, %c0_3] : memref<8x128xf32, #tpu.memory_space<vmem>>, vector<8x128xf32>
    %c0_4 = arith.constant 0 : index
    %c0_5 = arith.constant 0 : index
    %5 = vector.load %arg4[%c0_4, %c0_5] : memref<512x128xbf16, #tpu.memory_space<vmem>>, vector<512x128xbf16>
    %cst = arith.constant dense<0.000000e+00> : vector<8x128xf32>
    %6 = tpu.matmul %3, %5, %cst {dimension_numbers = #tpu.dot_dimension_numbers<[1], [0], [0], [1], [0, 0, 1, 1], [], []>} : vector<8x512xbf16>, vector<512x128xbf16>, vector<8x128xf32> -> vector<8x128xf32>
    %7 = arith.addf %4, %6 : vector<8x128xf32>
    %c0_6 = arith.constant 0 : index
    %c0_7 = arith.constant 0 : index
    %8 = vector.load %arg8[%c0_6, %c0_7] : memref<8x128xf32, #tpu.memory_space<vmem>>, vector<8x128xf32>
    tpu.vector_store %arg8[%c0_6, %c0_7], %7 {strides = array<i32>} : memref<8x128xf32, #tpu.memory_space<vmem>>, vector<8x128xf32>,
    %c0_i32_8 = arith.constant 0 : i32
    %9 = arith.cmpi eq, %arg2, %c0_i32_8 : i32
    %10 = arith.extui %9 : i1 to i32
    %c0_i32_9 = arith.constant 0 : i32
    %11 = arith.cmpi ne, %10, %c0_i32_9 : i32
    scf.if %11 {
      %c0_10 = arith.constant 0 : index
      %c0_11 = arith.constant 0 : index
      %12 = vector.load %arg8[%c0_10, %c0_11] : memref<8x128xf32, #tpu.memory_space<vmem>>, vector<8x128xf32>
      %c0_12 = arith.constant 0 : index
      %c0_13 = arith.constant 0 : index
      %13 = vector.load %arg5[%c0_12, %c0_13] : memref<1x128xf32, #tpu.memory_space<vmem>>, vector<1x128xf32>
      %14 = vector.broadcast %13 : vector<1x128xf32> to vector<8x128xf32>
      %15 = arith.addf %12, %14 : vector<8x128xf32>
      %c0_14 = arith.constant 0 : index
      %c0_15 = arith.constant 0 : index
      %16 = vector.load %arg6[%c0_14, %c0_15] : memref<8x128xf32, #tpu.memory_space<vmem>>, vector<8x128xf32>
      %17 = arith.addf %15, %16 : vector<8x128xf32>
      %c0_16 = arith.constant 0 : index
      %c0_17 = arith.constant 0 : index
      %18 = vector.load %arg7[%c0_16, %c0_17] : memref<8x128xf32, #tpu.memory_space<vmem>>, vector<8x128xf32>
      tpu.vector_store %arg7[%c0_16, %c0_17], %17 {strides = array<i32>} : memref<8x128xf32, #tpu.memory_space<vmem>>, vector<8x128xf32>,
    } else {
    }
    return
  }
  func.func @transform_0(%arg0: i32, %arg1: i32, %arg2: i32) -> (i32, i32) {
    %c0_i32 = arith.constant 0 : i32
    return %arg0, %arg2 : i32, i32
  }
  func.func @transform_1(%arg0: i32, %arg1: i32, %arg2: i32) -> (i32, i32) {
    %c0_i32 = arith.constant 0 : i32
    return %arg2, %arg1 : i32, i32
  }
  func.func @transform_2(%arg0: i32, %arg1: i32, %arg2: i32) -> (i32, i32) {
    %c0_i32 = arith.constant 0 : i32
    %c0_i32_0 = arith.constant 0 : i32
    return %c0_i32, %arg1 : i32, i32
  }
  func.func @transform_3(%arg0: i32, %arg1: i32, %arg2: i32) -> (i32, i32) {
    %c0_i32 = arith.constant 0 : i32
    return %arg0, %arg1 : i32, i32
  }
  func.func @transform_4(%arg0: i32, %arg1: i32, %arg2: i32) -> (i32, i32) {
    %c0_i32 = arith.constant 0 : i32
    return %arg0, %arg1 : i32, i32
  }
}

module attributes {stable_mosaic.version = 11 : i64} {
  func.func @_layernorm_kernel(%arg0: i32, %arg1: memref<8x128xf32, #tpu.memory_space<vmem>>, %arg2: memref<1x128xf32, #tpu.memory_space<vmem>>, %arg3: memref<1x128xf32, #tpu.memory_space<vmem>>, %arg4: memref<8x128xf32, #tpu.memory_space<vmem>>) attributes {dimension_semantics = [#tpu.dimension_semantics<parallel>], iteration_bounds = array<i64: 1>, scalar_prefetch = 0 : i64, scratch_operands = 0 : i64, tpu.core_type = #tpu.core_type<tc>, window_params = [{transform_indices = @transform_0, window_bounds = array<i64: 8, 128>}, {pipeline_mode = #tpu.pipeline_mode<synchronous>, transform_indices = @transform_1, window_bounds = array<i64: 1, 128>}, {pipeline_mode = #tpu.pipeline_mode<synchronous>, transform_indices = @transform_2, window_bounds = array<i64: 1, 128>}, {transform_indices = @transform_3, window_bounds = array<i64: 8, 128>}]} {
    %c0 = arith.constant 0 : index
    %c0_0 = arith.constant 0 : index
    %0 = vector.load %arg1[%c0, %c0_0] : memref<8x128xf32, #tpu.memory_space<vmem>>, vector<8x128xf32>
    %cst = arith.constant dense<0.000000e+00> : vector<8xf32>
    %1 = vector.multi_reduction <add>, %0, %cst [1] : vector<8x128xf32> to vector<8xf32>
    %2 = vector.shape_cast %1 : vector<8xf32> to vector<8x1xf32>
    %cst_1 = arith.constant 1.280000e+02 : f32
    %3 = vector.broadcast %cst_1 : f32 to vector<8x1xf32>
    %4 = arith.divf %2, %3 : vector<8x1xf32>
    %5 = vector.broadcast %4 : vector<8x1xf32> to vector<8x128xf32>
    %6 = arith.subf %0, %5 : vector<8x128xf32>
    %7 = arith.mulf %6, %6 : vector<8x128xf32>
    %cst_2 = arith.constant dense<0.000000e+00> : vector<8xf32>
    %8 = vector.multi_reduction <add>, %7, %cst_2 [1] : vector<8x128xf32> to vector<8xf32>
    %9 = vector.shape_cast %8 : vector<8xf32> to vector<8x1xf32>
    %cst_3 = arith.constant 1.280000e+02 : f32
    %10 = vector.broadcast %cst_3 : f32 to vector<8x1xf32>
    %11 = arith.divf %9, %10 : vector<8x1xf32>
    %12 = vector.broadcast %4 : vector<8x1xf32> to vector<8x128xf32>
    %13 = arith.subf %0, %12 : vector<8x128xf32>
    %cst_4 = arith.constant 9.99999974E-6 : f32
    %14 = vector.broadcast %cst_4 : f32 to vector<8x1xf32>
    %15 = arith.addf %11, %14 : vector<8x1xf32>
    %16 = math.rsqrt %15 : vector<8x1xf32>
    %17 = vector.broadcast %16 : vector<8x1xf32> to vector<8x128xf32>
    %18 = arith.mulf %13, %17 : vector<8x128xf32>
    %c0_5 = arith.constant 0 : index
    %c0_6 = arith.constant 0 : index
    %19 = vector.load %arg2[%c0_5, %c0_6] : memref<1x128xf32, #tpu.memory_space<vmem>>, vector<1x128xf32>
    %20 = vector.broadcast %19 : vector<1x128xf32> to vector<8x128xf32>
    %21 = arith.mulf %18, %20 : vector<8x128xf32>
    %c0_7 = arith.constant 0 : index
    %c0_8 = arith.constant 0 : index
    %22 = vector.load %arg3[%c0_7, %c0_8] : memref<1x128xf32, #tpu.memory_space<vmem>>, vector<1x128xf32>
    %23 = vector.broadcast %22 : vector<1x128xf32> to vector<8x128xf32>
    %24 = arith.addf %21, %23 : vector<8x128xf32>
    %c0_9 = arith.constant 0 : index
    %c0_10 = arith.constant 0 : index
    %25 = vector.load %arg4[%c0_9, %c0_10] : memref<8x128xf32, #tpu.memory_space<vmem>>, vector<8x128xf32>
    tpu.vector_store %arg4[%c0_9, %c0_10], %24 {strides = array<i32>} : memref<8x128xf32, #tpu.memory_space<vmem>>, vector<8x128xf32>,
    return
  }
  func.func @transform_0(%arg0: i32) -> (i32, i32) {
    %c0_i32 = arith.constant 0 : i32
    %c0_i32_0 = arith.constant 0 : i32
    return %arg0, %c0_i32 : i32, i32
  }
  func.func @transform_1(%arg0: i32) -> (i32, i32) {
    %c0_i32 = arith.constant 0 : i32
    %c0_i32_0 = arith.constant 0 : i32
    %c0_i32_1 = arith.constant 0 : i32
    return %c0_i32, %c0_i32_0 : i32, i32
  }
  func.func @transform_2(%arg0: i32) -> (i32, i32) {
    %c0_i32 = arith.constant 0 : i32
    %c0_i32_0 = arith.constant 0 : i32
    %c0_i32_1 = arith.constant 0 : i32
    return %c0_i32, %c0_i32_0 : i32, i32
  }
  func.func @transform_3(%arg0: i32) -> (i32, i32) {
    %c0_i32 = arith.constant 0 : i32
    %c0_i32_0 = arith.constant 0 : i32
    return %arg0, %c0_i32 : i32, i32
  }
}

</mosaic_0001>

<bundles_post_ra>
// kernel: forward.12
= control target key start
LH: loop header
LB: loop body
LE: loop exit
PB: predicated region body
PF: predicated region fallthrough
CT: control target
= control target key end

     0   :  { %v457_v1 = vmov 0.0   ;;  %vm458_vm0 = vmmov 0   ;;  %s580_s1 = inlined_call_operand.vmem [shape: bf16[384,128], index: 1, kind: input, shape index: {}]   ;;  %s581_s0 = inlined_call_operand.vmem [shape: bf16[16,384], index: 0, kind: input, shape index: {}]   ;;  %s582_s2 = inlined_call_operand.vmem [shape: f32[1,128], index: 2, kind: input, shape index: {}]   ;;  %s583_s3 = inlined_call_operand.vmem [shape: f32[16,128], index: 3, kind: input, shape index: {}]   ;;  %s584_s4 = inlined_call_operand.vmem [shape: f32[16,128], index: 4, kind: output, shape index: {}]  }
   0x1   :  { %v429_v0 = vld [vmem:[%s580_s1 + $0x40] sm:$0xff]   ;;  %407 = vmatprep.subr.bf16.mxu1 %v457_v1  ;;  %423 = vmatprep.mubr.msk.bf16.mxu1 %vm458_vm0, %v457_v1  ;;  %v432_v4 = vld [vmem:[%s580_s1 + $0x48] sm:$0xff]   ;;  %v435_v7 = vld [vmem:[%s580_s1 + $0x50] sm:$0xff]  }
   0x2   :  { %v430_v2 = vld [vmem:[%s580_s1] sm:$0xff]   ;;  %376 = vmatprep.subr.bf16.mxu0 %v429_v0  ;;  %v433_v5 = vld [vmem:[%s580_s1 + $0x8] sm:$0xff]   ;;  %v436_v8 = vld [vmem:[%s580_s1 + $0x10] sm:$0xff]  }
   0x3   :  { %v431_v3 = vld [vmem:[%s580_s1 + $0x80] sm:$0xff]   ;;  %377 = vmatpush3.bf16.msra.mxu0 %v430_v2  ;;  %v434_v6 = vld [vmem:[%s580_s1 + $0x88] sm:$0xff]   ;;  %v437_v9 = vld [vmem:[%s580_s1 + $0x90] sm:$0xff]  }
   0x4   :  { %408 = vmatpush3.bf16.msra.mxu1 %v431_v3  ;;  %378 = vmatprep.subr.bf16.mxu0 %v432_v4  ;;  %v438_v10 = vld [vmem:[%s580_s1 + $0x58] sm:$0xff]   ;;  %v441_v13 = vld [vmem:[%s580_s1 + $0x60] sm:$0xff]   ;;  %v444_v16 = vld [vmem:[%s580_s1 + $0x68] sm:$0xff]  }
   0x5   :  { %409 = vmatprep.subr.bf16.mxu1 %v457_v1  ;;  %v439_v11 = vld [vmem:[%s580_s1 + $0x18] sm:$0xff]   ;;  %v442_v14 = vld [vmem:[%s580_s1 + $0x20] sm:$0xff]   ;;  %v445_v17 = vld [vmem:[%s580_s1 + $0x28] sm:$0xff]  }
   0x6   :  { %v440_v12 = vld [vmem:[%s580_s1 + $0x98] sm:$0xff]   ;;  %v443_v15 = vld [vmem:[%s580_s1 + $0xa0] sm:$0xff]   ;;  %v446_v18 = vld [vmem:[%s580_s1 + $0xa8] sm:$0xff]  }
   0x7   :  { %379 = vmatpush3.bf16.msra.mxu0 %v433_v5  ;;  %v447_v19 = vld [vmem:[%s580_s1 + $0x70] sm:$0xff]   ;;  %v450_v22 = vld [vmem:[%s580_s1 + $0x78] sm:$0xff]   ;;  %v453_v26 = vld [vmem:[%s581_s0] ss:$12 sps:$4 sm:$0xff]  }
   0x8   :  { %410 = vmatpush3.bf16.msra.mxu1 %v434_v6  ;;  %380 = vmatprep.subr.bf16.mxu0 %v435_v7  ;;  %v448_v20 = vld [vmem:[%s580_s1 + $0x30] sm:$0xff]   ;;  %v451_v24 = vld [vmem:[%s580_s1 + $0x38] sm:$0xff]   ;;  %v375_v34 = vld [vmem:[%s582_s2] ss:$0 sm:$0xff] }
   0x9   :  { %411 = vmatprep.subr.bf16.mxu1 %v457_v1  ;;  %v449_v21 = vld [vmem:[%s580_s1 + $0xb0] sm:$0xff]   ;;  %v452_v25 = vld [vmem:[%s580_s1 + $0xb8] sm:$0xff]   ;;  %v338_v40 = vld [vmem:[%s583_s3] sm:$0xff] }
   0xa   :  { %v455_v23 = vld [vmem:[%s581_s0 + $0x4] ss:$12 sps:$4 sm:$0xff]   ;;  %v456_v27 = vld [vmem:[%s581_s0 + $0x8] ss:$12 sps:$4 sm:$0xff]  }
   0xb   :  { %381 = vmatpush3.bf16.msra.mxu0 %v436_v8  ;;  %270 = vmatprep.mubr.bf16.mxu0 %v455_v23  ;;  %v339_v43 = vld [vmem:[%s583_s3 + $0x8] sm:$0xff] }
   0xc   :  { %412 = vmatpush3.bf16.msra.mxu1 %v437_v9  ;;  %382 = vmatprep.subr.bf16.mxu0 %v438_v10 }
   0xd   :  { %413 = vmatprep.subr.bf16.mxu1 %v457_v1 }
   0xf   :  { %383 = vmatpush3.bf16.msra.mxu0 %v439_v11 }
  0x10   :  { %414 = vmatpush3.bf16.msra.mxu1 %v440_v12  ;;  %384 = vmatprep.subr.bf16.mxu0 %v441_v13 }
  0x11   :  { %415 = vmatprep.subr.bf16.mxu1 %v457_v1 }
  0x13   :  { %385 = vmatpush3.bf16.msra.mxu0 %v442_v14 }
  0x14   :  { %416 = vmatpush3.bf16.msra.mxu1 %v443_v15  ;;  %386 = vmatprep.subr.bf16.mxu0 %v444_v16 }
  0x15   :  { %417 = vmatprep.subr.bf16.mxu1 %v457_v1 }
  0x17   :  { %387 = vmatpush3.bf16.msra.mxu0 %v445_v17 }
  0x18   :  { %418 = vmatpush3.bf16.msra.mxu1 %v446_v18  ;;  %388 = vmatprep.subr.bf16.mxu0 %v447_v19 }
  0x19   :  { %419 = vmatprep.subr.bf16.mxu1 %v457_v1 }
  0x1b   :  { %389 = vmatpush3.bf16.msra.mxu0 %v448_v20 }
  0x1c   :  { %420 = vmatpush3.bf16.msra.mxu1 %v449_v21  ;;  %390 = vmatprep.subr.bf16.mxu0 %v450_v22 }
  0x1d   :  { %421 = vmatprep.subr.bf16.mxu1 %v457_v1 }
  0x1f   :  { %391 = vmatpush3.bf16.msra.mxu0 %v451_v24 }
  0x20   :  { %422 = vmatpush3.bf16.msra.mxu1 %v452_v25 }
  0x22   :  { %271 = vmatmul.mubr.bf16.vlgmr.msra.gmra.mrb[0].mxu0 %v453_v26 }
  0x23   :  { %424 = vmatmul.mubr.bf16.vlgmr.msra.gmra.mrb[0].mxu1 %v456_v27 }
  0xf5   :  { %v392_v28 = vpop.f32.mrb[0].mxu0 }
  0xf6   :  { %v313_v29 = vpop.f32.mrb[0].mxu1  ;;  %v393_v30 = vpop.f32.mrb[1].mxu0 }
  0xf7   :  { %v394_v31 = vadd.f32 %v393_v30, %v392_v28  ;;  %v425_v32 = vpop.f32.mrb[1].mxu1  ;;  %v395_v33 = vpop.f32.mrb[2].mxu0 }
  0xf8   :  { %v316_v35 = vpop.f32.mrb[2].mxu1  ;;  %v396_v36 = vpop.f32.mrb[3].mxu0 }
  0xf9   :  { %v314_v37 = vadd.f32 %v394_v31, %v313_v29  ;;  %v397_v38 = vadd.f32 %v396_v36, %v395_v33  ;;  %v426_v39 = vpop.f32.mrb[3].mxu1 }
  0xfb   :  { %v336_v41 = vadd.f32 %v375_v34, %v314_v37  ;;  %v317_v42 = vadd.f32 %v397_v38, %v316_v35 }
  0xfd   :  { %v340_v44 = vadd.f32 %v338_v40, %v336_v41  ;;  %v337_v45 = vadd.f32 %v375_v34, %v317_v42 }
  0xff   :  { %342 = vst [vmem:[%s584_s4] sm:$0xff] %v340_v44  ;;  %v341_v46 = vadd.f32 %v339_v43, %v337_v45 }
 0x101   :  { %343 = vst [vmem:[%s584_s4 + $0x8] sm:$0xff] %v341_v46 }

// kernel: forward.15
= control target key start
LH: loop header
LB: loop body
LE: loop exit
PB: predicated region body
PF: predicated region fallthrough
CT: control target
= control target key end

     0   :  { %v198_v0 = vmov 0.0   ;;  %vm199_vm0 = vmmov 0   ;;  %s261_s1 = inlined_call_operand.vmem [shape: bf16[128,128], index: 1, kind: input, shape index: {}]   ;;  %s262_s0 = inlined_call_operand.vmem [shape: bf16[8,128], index: 0, kind: input, shape index: {}]   ;;  %s263_s2 = inlined_call_operand.vmem [shape: f32[1,128], index: 2, kind: input, shape index: {}]   ;;  %s264_s3 = inlined_call_operand.vmem [shape: f32[8,128], index: 3, kind: input, shape index: {}]   ;;  %s265_s4 = inlined_call_operand.vmem [shape: f32[8,128], index: 4, kind: output, shape index: {}]  }
   0x1   :  { %168 = vmatprep.subr.bf16.mxu0 %v198_v0  ;;  %v190_v1 = vld [vmem:[%s261_s1] sm:$0xff]   ;;  %184 = vmatprep.mubr.msk.bf16.mxu0 %vm199_vm0, %v198_v0  ;;  %v191_v2 = vld [vmem:[%s261_s1 + $0x8] sm:$0xff]   ;;  %v192_v3 = vld [vmem:[%s261_s1 + $0x10] sm:$0xff]  }
   0x2   :  { %169 = vmatpush3.bf16.msra.mxu0 %v190_v1  ;;  %v193_v4 = vld [vmem:[%s261_s1 + $0x18] sm:$0xff]   ;;  %v194_v5 = vld [vmem:[%s261_s1 + $0x20] sm:$0xff]   ;;  %v195_v6 = vld [vmem:[%s261_s1 + $0x28] sm:$0xff]  }
   0x3   :  { %170 = vmatprep.subr.bf16.mxu0 %v198_v0  ;;  %v196_v7 = vld [vmem:[%s261_s1 + $0x30] sm:$0xff]   ;;  %v197_v8 = vld [vmem:[%s261_s1 + $0x38] sm:$0xff]   ;;  %v23_v9 = vld [vmem:[%s262_s0] sm:$0xf] }
   0x4   :  { %v158_v10 = vld [vmem:[%s263_s2] ss:$0 sm:$0xff] }
   0x5   :  { %v143_v12 = vld [vmem:[%s264_s3] sm:$0xff] }
   0x6   :  { %171 = vmatpush3.bf16.msra.mxu0 %v191_v2 }
   0x7   :  { %172 = vmatprep.subr.bf16.mxu0 %v198_v0 }
   0xa   :  { %173 = vmatpush3.bf16.msra.mxu0 %v192_v3 }
   0xb   :  { %174 = vmatprep.subr.bf16.mxu0 %v198_v0 }
   0xe   :  { %175 = vmatpush3.bf16.msra.mxu0 %v193_v4 }
   0xf   :  { %176 = vmatprep.subr.bf16.mxu0 %v198_v0 }
  0x12   :  { %177 = vmatpush3.bf16.msra.mxu0 %v194_v5 }
  0x13   :  { %178 = vmatprep.subr.bf16.mxu0 %v198_v0 }
  0x16   :  { %179 = vmatpush3.bf16.msra.mxu0 %v195_v6 }
  0x17   :  { %180 = vmatprep.subr.bf16.mxu0 %v198_v0 }
  0x1a   :  { %181 = vmatpush3.bf16.msra.mxu0 %v196_v7 }
  0x1b   :  { %182 = vmatprep.subr.bf16.mxu0 %v198_v0 }
  0x1e   :  { %183 = vmatpush3.bf16.msra.mxu0 %v197_v8 }
  0x21   :  { %185 = vmatmul.mubr.bf16.vlgmr.msra.gmra.mrb[0].mxu0 %v23_v9 }
  0xf4   :  { %v123_v11 = vpop.f32.mrb[0].mxu0 }
  0xf5   :  { %v142_v13 = vadd.f32 %v158_v10, %v123_v11  ;;  %v186_v14 = vpop.f32.mrb[1].mxu0 }
  0xf6   :  { %v126_v15 = vpop.f32.mrb[2].mxu0 }
  0xf7   :  { %v144_v16 = vadd.f32 %v143_v12, %v142_v13  ;;  %v187_v17 = vpop.f32.mrb[3].mxu0 }
  0xf9   :  { %145 = vst [vmem:[%s265_s4] sm:$0xff] %v144_v16 }

// kernel: forward.14
= control target key start
LH: loop header
LB: loop body
LE: loop exit
PB: predicated region body
PF: predicated region fallthrough
CT: control target
= control target key end

     0   :  { %s1038_s12 = smov 0   ;;  %s1040_s13 = smov 0   ;;  %s1155_s0 = inlined_call_operand.vmem [shape: bf16[2,4,384], index: 0, kind: input, shape index: {}, may-alias: {0,1,2}]   ;;  %s1156_s1 = inlined_call_operand.vmem [shape: bf16[2,4,384], index: 1, kind: input, shape index: {}, may-alias: {0,1,2}]   ;;  %s1157_s2 = inlined_call_operand.vmem [shape: bf16[2,4,384], index: 2, kind: input, shape index: {}, may-alias: {0,1,2}]   ;;  %s1158_s3 = inlined_call_operand.vmem [shape: bf16[2,4,128], index: 3, kind: output, shape index: {}]  }
   0x1   :  { %s1042_s14 = smov 0  }
   0x2 LB: > { %s25_s15 = sadd.s32 1, %s1006_s13  ;;  %p860_p0 = scmp.ge.s32.totalorder %s1010_s14, 1  ;;  %s1010_s14 = sphi %s1042_s14, %s13_s14   ;;  %s1006_s13 = sphi %s1040_s13, %s1160_s13   ;;  %s1002_s12 = sphi %s1038_s12, %s1159_s12  }
   0x3   : > { %p27_p1 = scmp.ge.s32.totalorder %s25_s15, 2  ;;  %p179_p2 = scmp.lt.s32.totalorder %s1010_s14, 3 }
   0x5   : > { %s1162_s15 = smov (%p27_p1, %s25_s15), 0  ;;  %p180_p3 = pnand %p860_p0, %p179_p2 }
   0x6   : > { %p221_p4 = scmp.lt.s32.totalorder (!%p180_p3), %s1002_s12, 1  ;;  %v1012_v0 = vmov (!%p180_p3), 0.0   ;;  %vm1013_vm0 = vmmov (!%p180_p3), 0   ;;  %vm255_vm1 = vcmask (!%p180_p3), 261120   ;;  %vm302_vm2 = vcmask (!%p180_p3), 27648   ;;  %s1015_s23 = smov (!%p180_p3), 96  }
   0x7   : > { %183 = sbr.rel (%p180_p3) target bundleno = 1482 (0x5ca), region = 32  ;;  %893 = vmatprep.subr.bf16.mxu0 (!%p180_p3), %v1012_v0  ;;  %899 = vmatprep.subr.bf16.mxu1 (!%p180_p3), %v1012_v0  ;;  %v1014_v10 = vmov (!%p180_p3), 1983009808   ;;  %v369_v12 = vlaneseq (!%p180_p3)  ;;  %s1016_s24 = smov (!%p180_p3), 64   ;;  %vm319_vm3 = vcmask (!%p180_p3), 1041408   ;;  %vm315_vm4 = vcmask (!%p180_p3), 31744  }
   0x8   : > { %895 = vmatprep.mubr.msk.bf16.mxu0 (!%p180_p3), %vm1013_vm0, %v1012_v0  ;;  %901 = vmatprep.mubr.msk.bf16.mxu1 (!%p180_p3), %vm1013_vm0, %v1012_v0  ;;  %v367_v11 = vunpack.c.l.s4 (!%p180_p3), %v1014_v10  ;;  %s1017_s25 = smov (!%p180_p3), 32   ;;  %vm363_vm5 = vcmask (!%p180_p3), 257024   ;;  %vm503_vm6 = vcmask (!%p180_p3), 519424   ;;  %vm619_vm7 = vcmask (!%p180_p3), 781824  }
   0x9   : > { %v370_v14 = vshrl.u32 (!%p180_p3), %v369_v12, 7  ;;  %vm735_vm8 = vcmask (!%p180_p3), 1044224  }
   0xa   : > { %v368_v13 = vunpack.c.0.s8 (!%p180_p3), %v367_v11 }
   0xc   : > { %v1081_v15 = vsub.s32 (!%p180_p3), %v368_v13, %v370_v14 }
   0xe   : > { %s1164_s12 = smov (!%p221_p4, %s1002_s12), 1 }
   0xf   : > { %s1065_s16 = smul.u32 6, %s1164_s12  ;;  %s864_s29 = sshll.u32 %s1164_s12, 1 }
  0x10   : > { %s248_s5 = scalar_lea.vmem %s1158_s3, %s864_s29 }
  0x11   : > { %s801_s19 = scalar_lea.vmem %s1156_s1, %s1065_s16  ;;  %s229_s22 = scalar_lea.vmem %s1155_s0, %s1065_s16 }
  0x12   : > { %v865_v1 = vld [vmem:[%s801_s19 + $0x2] sm:$0x3]  ;;  %v251_v3 = vld [vmem:[%s229_s22] sm:$0x3]  ;;  %s805_s28 = scalar_lea.vmem %s1157_s2, %s1065_s16 }
  0x13   : > { %v260_v2 = vsel %vm255_vm1, %v865_v1, 0  ;;  %v254_v4 = vmul.bf16 1043676725, %v251_v3  ;;  %v382_v16 = vrot.slane %v865_v1, %v1081_v15  ;;  %v1095_v23 = vld [vmem:[%s805_s28 + $0x4] sm:$0x3] }
  0x14   : > { %894 = vmatpush3.bf16.xpose.msra.mxu0 %v260_v2  ;;  %v321_v24 = vsel %vm319_vm3, %v1095_v23, 0 }
  0x15   : > { %911 = vmatprep.subr.bf16.mxu0 %v1012_v0  ;;  %383 = vrot.lane.b32.xlu1 %v382_v16, %s1015_s23  ;;  %v372_v17 = vrot.slane %v254_v4, %v1081_v15 }
  0x16   : > { %900 = vmatpush3.bf16.msra.mxu1 %v321_v24 }
  0x17   : > { %905 = vmatprep.subr.bf16.mxu1 %v1012_v0 }
  0x19   : > { %373 = vrot.lane.b32.xlu1 %v372_v17, %s1015_s23 }
  0x1b   : > { %896 = vmatmul.mubr.msk.bf16.vlgmr.msra.gmra.mrb[0].mxu0 %vm255_vm1, %v254_v4  ;;  %v450_v4 = vrot.slane %v1095_v23, %v1081_v15 }
  0x1c   : > { %913 = vmatprep.mubr.msk.bf16.mxu0 %vm1013_vm0, %v1012_v0 }
  0x1d   : > { %505 = vrot.lane.b32.xlu1 %v372_v17, %s1016_s24 }
  0x21   : > { %623 = vrot.lane.b32.xlu1 %v382_v16, %s1017_s25 }
  0x25   : > { %621 = vrot.lane.b32.xlu1 %v372_v17, %s1017_s25 }
  0x87   : > { %v384_v27 = vpop.permute.xlu1 %383 }
  0x88   : > { %v389_v29 = vsel %vm255_vm1, %v384_v27, 0 }
  0x8b   : > { %v374_v31 = vpop.permute.xlu1 %373 }
  0x8f   : > { %v506_v33 = vpop.permute.xlu1 %505 }
  0x93   : > { %v624_v35 = vpop.permute.xlu1 %623 }
  0x94   : > { %v629_v36 = vsel %vm255_vm1, %v624_v35, 0 }
  0x97   : > { %v622_v37 = vpop.permute.xlu1 %621 }
  0xee   : > { %v296_v5 = vpop.f32.mrb[0].mxu0 }
  0xef   : > { %v897_v6 = vpop.f32.mrb[1].mxu0  ;;  %v303_v7 = vsel %vm302_vm2, %v296_v5, -inf }
  0xf0   : > { %304 = vmax.xlane.f32.xlu0 %v303_v7  ;;  %v299_v8 = vpop.f32.mrb[2].mxu0 }
  0xf1   : > { %v898_v9 = vpop.f32.mrb[3].mxu0 }
 0x17d   : > { %v305_v18 = vpop.xlane.xlu0 %304 }
 0x17e   : > { %v306_v19 = vsub.f32 %v296_v5, %v305_v18 }
 0x180   : > { %v307_v20 = vmul.f32 1.442695, %v306_v19 }
 0x182   : > { %972 = vpow2.f32 %v307_v20 }
 0x18c   : > { %v973_v21 = vpop.eup %972 }
 0x18d   : > { %v309_v22 = vsel %vm302_vm2, %v973_v21, 0.0 }
 0x18e   : > { %310 = vadd.xlane.f32.xlu0 %v309_v22 }
 0x1a4   : > { %507 = vrot.lane.b32.xlu0 %v382_v16, %s1016_s24 }
 0x21b   : > { %v311_v25 = vpop.xlane.xlu0 %310 }
 0x21c   : > { %974 = vrcp.f32 %v311_v25 }
 0x21f   : > { %v508_v32 = vpop.permute.xlu0 %507 }
 0x220   : > { %v513_v34 = vsel %vm255_vm1, %v508_v32, 0 }
 0x226   : > { %v975_v26 = vpop.eup %974 }
 0x227   : > { %v313_v28 = vmul.f32 %v975_v26, %v973_v21 }
 0x229   : > { %v314_v30 = vpack.c.bf16 %v313_v28, %v313_v28 }
 0x22b   : > { %902 = vmatmul.mubr.msk.bf16.vlgmr.msra.gmra.mrb[0].mxu1 %vm315_vm4, %v314_v30 }
 0x22c   : > { %906 = vmatpush3.bf16.xpose.msra.mxu1 %v389_v29  ;;  %907 = vmatprep.mubr.msk.bf16.mxu1 %vm1013_vm0, %v1012_v0 }
 0x22d   : > { %917 = vmatprep.subr.bf16.mxu1 %v1012_v0 }
 0x233   : > { %908 = vmatmul.mubr.msk.bf16.vlgmr.msra.gmra.mrb[4].mxu1 %vm255_vm1, %v374_v31 }
 0x234   : > { %918 = vmatpush3.bf16.xpose.msra.mxu1 %v513_v34  ;;  %919 = vmatprep.mubr.msk.bf16.mxu1 %vm1013_vm0, %v1012_v0 }
 0x235   : > { %929 = vmatprep.subr.bf16.mxu1 %v1012_v0 }
 0x23b   : > { %920 = vmatmul.mubr.msk.bf16.vlgmr.msra.gmra.mrb[8].mxu1 %vm255_vm1, %v506_v33 }
 0x23c   : > { %930 = vmatpush3.bf16.xpose.msra.mxu1 %v629_v36  ;;  %931 = vmatprep.mubr.msk.bf16.mxu1 %vm1013_vm0, %v1012_v0 }
 0x243   : > { %932 = vmatmul.mubr.msk.bf16.vlgmr.msra.gmra.mrb[12].mxu1 %vm255_vm1, %v622_v37 }
 0x2fe   : > { %v357_v38 = vpop.f32.mrb[0].mxu1 }
 0x2ff   : > { %364 = vst.msk [vmem:[#allocation2] sm:$0xf] %vm363_vm5, %v357_v38  ;;  %v903_v39 = vpop.f32.mrb[1].mxu1 }
 0x300   : > { %v360_v40 = vpop.f32.mrb[2].mxu1 }
 0x301   : > { %v904_v41 = vpop.f32.mrb[3].mxu1 }
 0x306   : > { %v425_v42 = vpop.f32.mrb[4].mxu1 }
 0x307   : > { %v909_v43 = vpop.f32.mrb[5].mxu1  ;;  %v431_v44 = vsel %vm302_vm2, %v425_v42, -inf }
 0x308   : > { %432 = vmax.xlane.f32.xlu1 %v431_v44  ;;  %v428_v45 = vpop.f32.mrb[6].mxu1 }
 0x309   : > { %v910_v46 = vpop.f32.mrb[7].mxu1 }
 0x30e   : > { %v549_v47 = vpop.f32.mrb[8].mxu1 }
 0x30f   : > { %v555_v48 = vsel %vm302_vm2, %v549_v47, -inf  ;;  %v921_v49 = vpop.f32.mrb[9].mxu1 }
 0x310   : > { %556 = vmax.xlane.f32.xlu0 %v555_v48  ;;  %v552_v50 = vpop.f32.mrb[10].mxu1 }
 0x311   : > { %v922_v51 = vpop.f32.mrb[11].mxu1 }
 0x316   : > { %v665_v52 = vpop.f32.mrb[12].mxu1 }
 0x317   : > { %v671_v53 = vsel %vm302_vm2, %v665_v52, -inf  ;;  %v933_v54 = vpop.f32.mrb[13].mxu1 }
 0x318   : > { %672 = vmax.xlane.f32.xlu1 %v671_v53  ;;  %v668_v55 = vpop.f32.mrb[14].mxu1 }
 0x319   : > { %v934_v56 = vpop.f32.mrb[15].mxu1 }
 0x395   : > { %v433_v57 = vpop.xlane.xlu1 %432 }
 0x396   : > { %v434_v58 = vsub.f32 %v425_v42, %v433_v57 }
 0x398   : > { %v435_v59 = vmul.f32 1.442695, %v434_v58 }
 0x39a   : > { %976 = vpow2.f32 %v435_v59 }
 0x39d   : > { %v557_v60 = vpop.xlane.xlu0 %556 }
 0x39e   : > { %v558_v61 = vsub.f32 %v549_v47, %v557_v60 }
 0x3a0   : > { %v559_v62 = vmul.f32 1.442695, %v558_v61 }
 0x3a2   : > { %978 = vpow2.f32 %v559_v62 }
 0x3a4   : > { %v977_v63 = vpop.eup %976 }
 0x3a5   : > { %v437_v1 = vsel %vm302_vm2, %v977_v63, 0.0  ;;  %v673_v5 = vpop.xlane.xlu1 %672 }
 0x3a6   : > { %438 = vadd.xlane.f32.xlu1 %v437_v1  ;;  %v674_v6 = vsub.f32 %v665_v52, %v673_v5 }
 0x3a8   : > { %v675_v7 = vmul.f32 1.442695, %v674_v6 }
 0x3aa   : > { %980 = vpow2.f32 %v675_v7 }
 0x3ac   : > { %v979_v2 = vpop.eup %978 }
 0x3ad   : > { %v561_v3 = vsel %vm302_vm2, %v979_v2, 0.0 }
 0x3ae   : > { %562 = vadd.xlane.f32.xlu0 %v561_v3 }
 0x3b4   : > { %v981_v8 = vpop.eup %980 }
 0x3b5   : > { %v677_v9 = vsel %vm302_vm2, %v981_v8, 0.0 }
 0x3b7   : > { %567 = vrot.lane.b32.xlu1 %v450_v4, %s1016_s24 }
 0x3c4   : > { %451 = vrot.lane.b32.xlu0 %v450_v4, %s1015_s23 }
 0x3db   : > { %678 = vadd.xlane.f32.xlu1 %v677_v9 }
 0x3ec   : > { %683 = vrot.lane.b32.xlu1 %v450_v4, %s1017_s25 }
 0x433   : > { %v439_v10 = vpop.xlane.xlu1 %438 }
 0x434   : > { %982 = vrcp.f32 %v439_v10 }
 0x437   : > { %v568_v16 = vpop.permute.xlu1 %567 }
 0x438   : > { %v573_v18 = vsel %vm319_vm3, %v568_v16, 0 }
 0x43b   : > { %v563_v11 = vpop.xlane.xlu0 %562 }
 0x43c   : > { %984 = vrcp.f32 %v563_v11 }
 0x43e   : > { %v983_v12 = vpop.eup %982 }
 0x43f   : > { %v441_v13 = vmul.f32 %v983_v12, %v977_v63  ;;  %v452_v14 = vpop.permute.xlu0 %451 }
 0x440   : > { %v457_v15 = vsel %vm319_vm3, %v452_v14, 0 }
 0x441   : > { %912 = vmatpush3.bf16.msra.mxu0 %v457_v15  ;;  %v442_v17 = vpack.c.bf16 %v441_v13, %v441_v13 }
 0x442   : > { %923 = vmatprep.subr.bf16.mxu0 %v1012_v0 }
 0x444   : > { %914 = vmatmul.mubr.msk.bf16.vlgmr.msra.gmra.mrb[4].mxu0 %vm315_vm4, %v442_v17 }
 0x445   : > { %924 = vmatpush3.bf16.msra.mxu0 %v573_v18  ;;  %925 = vmatprep.mubr.msk.bf16.mxu0 %vm1013_vm0, %v1012_v0 }
 0x446   : > { %v985_v19 = vpop.eup %984  ;;  %935 = vmatprep.subr.bf16.mxu0 %v1012_v0 }
 0x447   : > { %v565_v20 = vmul.f32 %v985_v19, %v979_v2 }
 0x449   : > { %v566_v21 = vpack.c.bf16 %v565_v20, %v565_v20 }
 0x44c   : > { %926 = vmatmul.mubr.msk.bf16.vlgmr.msra.gmra.mrb[8].mxu0 %vm315_vm4, %v566_v21 }
 0x44d   : > { %937 = vmatprep.mubr.msk.bf16.mxu0 %vm1013_vm0, %v1012_v0 }
 0x468   : > { %v679_v22 = vpop.xlane.xlu1 %678 }
 0x469   : > { %986 = vrcp.f32 %v679_v22 }
 0x46c   : > { %v684_v23 = vpop.permute.xlu1 %683 }
 0x46d   : > { %v689_v24 = vsel %vm319_vm3, %v684_v23, 0 }
 0x46e   : > { %936 = vmatpush3.bf16.msra.mxu0 %v689_v24 }
 0x473   : > { %v987_v25 = vpop.eup %986 }
 0x474   : > { %v681_v26 = vmul.f32 %v987_v25, %v981_v8 }
 0x476   : > { %v682_v27 = vpack.c.bf16 %v681_v26, %v681_v26 }
 0x478   : > { %938 = vmatmul.mubr.msk.bf16.vlgmr.msra.gmra.mrb[12].mxu0 %vm315_vm4, %v682_v27 }
 0x517   : > { %v493_v28 = vpop.f32.mrb[4].mxu0 }
 0x518   : > { %500 = vrot.lane.b32.xlu0 %v493_v28, %s1017_s25  ;;  %v915_v29 = vpop.f32.mrb[5].mxu0 }
 0x519   : > { %v496_v30 = vpop.f32.mrb[6].mxu0 }
 0x51a   : > { %v916_v31 = vpop.f32.mrb[7].mxu0 }
 0x51f   : > { %v609_v32 = vpop.f32.mrb[8].mxu0 }
 0x520   : > { %616 = vrot.lane.b32.xlu1 %v609_v32, %s1016_s24  ;;  %v927_v0 = vpop.f32.mrb[9].mxu0 }
 0x521   : > { %v612_v33 = vpop.f32.mrb[10].mxu0 }
 0x522   : > { %v928_v34 = vpop.f32.mrb[11].mxu0 }
 0x54b   : > { %v725_v35 = vpop.f32.mrb[12].mxu0 }
 0x54c   : > { %732 = vrot.lane.b32.xlu0 %v725_v35, %s1015_s23  ;;  %v939_v36 = vpop.f32.mrb[13].mxu0 }
 0x54d   : > { %v728_v37 = vpop.f32.mrb[14].mxu0 }
 0x54e   : > { %v940_v38 = vpop.f32.mrb[15].mxu0 }
 0x58a   : > { %v501_v39 = vpop.permute.xlu0 %500 }
 0x58b   : > { %504 = vst.msk [vmem:[#allocation2] sm:$0xf] %vm503_vm6, %v501_v39 }
 0x592   : > { %v617_v40 = vpop.permute.xlu1 %616 }
 0x593   : > { %620 = vst.msk [vmem:[#allocation2] sm:$0xf] %vm619_vm7, %v617_v40 }
 0x5be   : > { %v733_v41 = vpop.permute.xlu0 %732 }
 0x5bf   : > { %736 = vst.msk [vmem:[#allocation2] sm:$0xf] %vm735_vm8, %v733_v41 }
 0x5c6   : > { %v737_v42 = vld [vmem:[#allocation2] sm:$0xf] }
 0x5c7   : > { %v738_v43 = vpack.c.bf16 %v737_v42, %v737_v42 }
 0x5c9   : > { %739 = vst [vmem:[%s248_s5] sm:$0x3] %v738_v43 }
 0x5ca PF: > { %s13_s14 = sadd.s32 1, %s1010_s14   ;;  %s1159_s12 = smov %s1006_s13 }
 0x5cb   : > { %p10_p5 = scmp.ge.s32.totalorder %s13_s14, 4   ;;  %s1160_s13 = smov %s1162_s15 }
 0x5cd   :  { %12 = sbr.rel (!%p10_p5) target bundleno = 2 (0x2), region = 68 }

// kernel: forward.13
= control target key start
LH: loop header
LB: loop body
LE: loop exit
PB: predicated region body
PF: predicated region fallthrough
CT: control target
= control target key end

     0   :  { %v426_v2 = vmov 0.0   ;;  %v427_v25 = vmov 0   ;;  %vm428_vm0 = vmmov 0   ;;  %s541_s0 = inlined_call_operand.vmem [shape: f32[8,128], index: 0, kind: input, shape index: {}]   ;;  %s542_s1 = inlined_call_operand.vmem [shape: bf16[128,384], index: 1, kind: input, shape index: {}]   ;;  %s543_s2 = inlined_call_operand.vmem [shape: f32[1,128], index: 2, kind: input, shape index: {}]   ;;  %s544_s3 = inlined_call_operand.vmem [shape: f32[1,128], index: 3, kind: input, shape index: {}]   ;;  %s545_s4 = inlined_call_operand.vmem [shape: bf16[8,384], index: 4, kind: output, shape index: {}]  }
   0x1   :  { %v25_v0 = vld [vmem:[%s541_s0] sm:$0xff]  ;;  %369 = vmatprep.subr.bf16.mxu1 %v426_v2  ;;  %v395_v4 = vld [vmem:[%s542_s1 + $0x8] ss:$12 sps:$4 sm:$0xff]   ;;  %v402_v13 = vld [vmem:[%s542_s1 + $0x30] ss:$12 sps:$4 sm:$0xff]   ;;  %250 = vmatprep.mubr.bf16.mxu0 %v427_v25 }
   0x2   :  { %26 = vadd.xlane.f32.xlu0 %v25_v0  ;;  %v392_v1 = vld [vmem:[%s542_s1 + $0x4] ss:$12 sps:$4 sm:$0xff]   ;;  %v394_v3 = vld [vmem:[%s542_s1] ss:$12 sps:$4 sm:$0xff]   ;;  %v396_v5 = vld [vmem:[%s542_s1 + $0x1c] ss:$12 sps:$4 sm:$0xff]   ;;  %370 = vmatpush3.bf16.msra.mxu1 %v395_v4 }
   0x3   :  { %218 = vmatprep.subr.bf16.mxu0 %v392_v1  ;;  %v398_v6 = vld [vmem:[%s542_s1 + $0x18] ss:$12 sps:$4 sm:$0xff]   ;;  %v399_v7 = vld [vmem:[%s542_s1 + $0x20] ss:$12 sps:$4 sm:$0xff]   ;;  %371 = vmatprep.subr.bf16.mxu1 %v426_v2  ;;  %v406_v16 = vld [vmem:[%s542_s1 + $0x48] ss:$12 sps:$4 sm:$0xff]  }
   0x4   :  { %219 = vmatpush1.bf16.msra.mxu0 %v394_v3  ;;  %v400_v8 = vld [vmem:[%s542_s1 + $0x34] ss:$12 sps:$4 sm:$0xff]   ;;  %v403_v14 = vld [vmem:[%s542_s1 + $0x38] ss:$12 sps:$4 sm:$0xff]   ;;  %v407_v17 = vld [vmem:[%s542_s1 + $0x50] ss:$12 sps:$4 sm:$0xff]   ;;  %385 = vmatprep.mubr.msk.bf16.mxu1 %vm428_vm0, %v426_v2 }
   0x5   :  { %220 = vmatprep.subr.bf16.mxu0 %v396_v5  ;;  %v404_v15 = vld [vmem:[%s542_s1 + $0x4c] ss:$12 sps:$4 sm:$0xff]   ;;  %v408_v18 = vld [vmem:[%s542_s1 + $0x64] ss:$12 sps:$4 sm:$0xff]   ;;  %v411_v20 = vld [vmem:[%s542_s1 + $0x68] ss:$12 sps:$4 sm:$0xff]  }
   0x6   :  { %372 = vmatpush3.bf16.msra.mxu1 %v399_v7  ;;  %v410_v19 = vld [vmem:[%s542_s1 + $0x60] ss:$12 sps:$4 sm:$0xff]   ;;  %v412_v21 = vld [vmem:[%s542_s1 + $0x7c] ss:$12 sps:$4 sm:$0xff]   ;;  %v414_v22 = vld [vmem:[%s542_s1 + $0x78] ss:$12 sps:$4 sm:$0xff]  }
   0x7   :  { %373 = vmatprep.subr.bf16.mxu1 %v426_v2  ;;  %v415_v23 = vld [vmem:[%s542_s1 + $0x80] ss:$12 sps:$4 sm:$0xff]   ;;  %v418_v26 = vld [vmem:[%s542_s1 + $0x90] ss:$12 sps:$4 sm:$0xff]   ;;  %v419_v27 = vld [vmem:[%s542_s1 + $0x98] ss:$12 sps:$4 sm:$0xff]  }
   0x8   :  { %221 = vmatpush1.bf16.msra.mxu0 %v398_v6  ;;  %v416_v24 = vld [vmem:[%s542_s1 + $0x94] ss:$12 sps:$4 sm:$0xff]   ;;  %v420_v28 = vld [vmem:[%s542_s1 + $0xac] ss:$12 sps:$4 sm:$0xff]   ;;  %v423_v30 = vld [vmem:[%s542_s1 + $0xb0] ss:$12 sps:$4 sm:$0xff]  }
   0x9   :  { %222 = vmatprep.subr.bf16.mxu0 %v400_v8  ;;  %v422_v29 = vld [vmem:[%s542_s1 + $0xa8] ss:$12 sps:$4 sm:$0xff]   ;;  %v330_v35 = vld [vmem:[%s543_s2] ss:$0 sm:$0xff] }
   0xa   :  { %374 = vmatpush3.bf16.msra.mxu1 %v403_v14  ;;  %v331_v37 = vld [vmem:[%s544_s3] ss:$0 sm:$0xff] }
   0xb   :  { %375 = vmatprep.subr.bf16.mxu1 %v426_v2 }
   0xc   :  { %223 = vmatpush1.bf16.msra.mxu0 %v402_v13 }
   0xd   :  { %224 = vmatprep.subr.bf16.mxu0 %v404_v15 }
   0xe   :  { %376 = vmatpush3.bf16.msra.mxu1 %v407_v17 }
   0xf   :  { %377 = vmatprep.subr.bf16.mxu1 %v426_v2 }
  0x10   :  { %225 = vmatpush1.bf16.msra.mxu0 %v406_v16 }
  0x11   :  { %226 = vmatprep.subr.bf16.mxu0 %v408_v18 }
  0x12   :  { %378 = vmatpush3.bf16.msra.mxu1 %v411_v20 }
  0x13   :  { %379 = vmatprep.subr.bf16.mxu1 %v426_v2 }
  0x14   :  { %227 = vmatpush1.bf16.msra.mxu0 %v410_v19 }
  0x15   :  { %228 = vmatprep.subr.bf16.mxu0 %v412_v21 }
  0x16   :  { %380 = vmatpush3.bf16.msra.mxu1 %v415_v23 }
  0x17   :  { %381 = vmatprep.subr.bf16.mxu1 %v426_v2 }
  0x18   :  { %229 = vmatpush1.bf16.msra.mxu0 %v414_v22 }
  0x19   :  { %230 = vmatprep.subr.bf16.mxu0 %v416_v24 }
  0x1a   :  { %382 = vmatpush3.bf16.msra.mxu1 %v419_v27 }
  0x1b   :  { %383 = vmatprep.subr.bf16.mxu1 %v426_v2 }
  0x1c   :  { %231 = vmatpush1.bf16.msra.mxu0 %v418_v26 }
  0x1d   :  { %232 = vmatprep.subr.bf16.mxu0 %v420_v28 }
  0x1e   :  { %384 = vmatpush3.bf16.msra.mxu1 %v423_v30 }
  0x20   :  { %233 = vmatpush1.bf16.msra.mxu0 %v422_v29 }
  0x8f   :  { %v27_v9 = vpop.xlane.xlu0 %26 }
  0x90   :  { %v29_v10 = vmul.f32 0.0078125, %v27_v9 }
  0x92   :  { %v30_v11 = vsub.f32 %v25_v0, %v29_v10 }
  0x94   :  { %v31_v12 = vmul.f32 %v30_v11, %v30_v11 }
  0x96   :  { %32 = vadd.xlane.f32.xlu0 %v31_v12 }
 0x123   :  { %v33_v31 = vpop.xlane.xlu0 %32 }
 0x124   :  { %v34_v32 = vmul.f32 0.0078125, %v33_v31 }
 0x126   :  { %v35_v33 = vadd.f32 1e-05, %v34_v32 }
 0x128   :  { %424 = vrsqrt.f32 %v35_v33 }
 0x132   :  { %v425_v34 = vpop.eup %424 }
 0x133   :  { %v37_v36 = vmul.f32 %v425_v34, %v30_v11 }
 0x135   :  { %v45_v38 = vmul.f32 %v330_v35, %v37_v36 }
 0x137   :  { %v53_v39 = vadd.f32 %v331_v37, %v45_v38 }
 0x139   :  { %v54_v40 = vpack.c.bf16 %v53_v39, %v53_v39 }
 0x13b   :  { %251 = vmatmul.mubr.bf16.vlgmr.msra.gmra.mrb[0].mxu0 %v54_v40  ;;  %386 = vmatmul.mubr.bf16.vlgmr.msra.gmra.mrb[0].mxu1 %v54_v40 }
 0x20e   :  { %v252_v41 = vpop.f32.mrb[0].mxu0  ;;  %v293_v42 = vpop.f32.mrb[0].mxu1 }
 0x20f   :  { %v359_v43 = vpack.c.bf16 %v293_v42, %v293_v42  ;;  %v254_v44 = vpop.f32.mrb[1].mxu0  ;;  %v387_v45 = vpop.f32.mrb[1].mxu1 }
 0x210   :  { %v358_v46 = vpack.c.bf16 %v254_v44, %v252_v41  ;;  %v256_v47 = vpop.f32.mrb[2].mxu0  ;;  %v296_v48 = vpop.f32.mrb[2].mxu1 }
 0x211   :  { %325 = vst [vmem:[%s545_s4 + $0x8] sm:$0xf] %v359_v43  ;;  %v257_v49 = vpop.f32.mrb[3].mxu0  ;;  %v388_v50 = vpop.f32.mrb[3].mxu1 }
 0x212   :  { %324 = vst [vmem:[%s545_s4] sm:$0xff] %v358_v46 }

// kernel: forward.16
= control target key start
LH: loop header
LB: loop body
LE: loop exit
PB: predicated region body
PF: predicated region fallthrough
CT: control target
= control target key end

     0   :  { %v533_v31 = vmov 0   ;;  %v354_v48 = vlaneseq  ;;  %s678_s0 = inlined_call_operand.vmem [shape: f32[8,128], index: 0, kind: input, shape index: {}]   ;;  %s679_s1 = inlined_call_operand.vmem [shape: bf16[128,512], index: 1, kind: input, shape index: {}]   ;;  %s680_s2 = inlined_call_operand.vmem [shape: f32[1,128], index: 2, kind: input, shape index: {}]   ;;  %s681_s3 = inlined_call_operand.vmem [shape: f32[1,128], index: 3, kind: input, shape index: {}]   ;;  %s682_s4 = inlined_call_operand.vmem [shape: f32[1,512], index: 4, kind: input, shape index: {}]   ;;  %s683_s5 = inlined_call_operand.vmem [shape: bf16[8,512], index: 5, kind: output, shape index: {}]  }
   0x1   :  { %v29_v0 = vld [vmem:[%s678_s0] sm:$0xff]  ;;  %v477_v2 = vld [vmem:[%s679_s1 + $0xc] ss:$16 sps:$4 sm:$0xff]   ;;  %v480_v4 = vld [vmem:[%s679_s1 + $0x8] ss:$16 sps:$4 sm:$0xff]   ;;  %287 = vmatprep.mubr.bf16.mxu0 %v533_v31  ;;  %328 = vmatprep.mubr.bf16.mxu1 %v533_v31 }
   0x2   :  { %30 = vadd.xlane.f32.xlu0 %v29_v0  ;;  %v475_v1 = vld [vmem:[%s679_s1 + $0x4] ss:$16 sps:$4 sm:$0xff]   ;;  %v479_v3 = vld [vmem:[%s679_s1] ss:$16 sps:$4 sm:$0xff]   ;;  %296 = vmatprep.subr.bf16.mxu1 %v477_v2  ;;  %v483_v6 = vld [vmem:[%s679_s1 + $0x2c] ss:$16 sps:$4 sm:$0xff]  }
   0x3   :  { %255 = vmatprep.subr.bf16.mxu0 %v475_v1  ;;  %v481_v5 = vld [vmem:[%s679_s1 + $0x24] ss:$16 sps:$4 sm:$0xff]   ;;  %297 = vmatpush1.bf16.msra.mxu1 %v480_v4  ;;  %v485_v7 = vld [vmem:[%s679_s1 + $0x20] ss:$16 sps:$4 sm:$0xff]   ;;  %v486_v8 = vld [vmem:[%s679_s1 + $0x28] ss:$16 sps:$4 sm:$0xff]  }
   0x4   :  { %256 = vmatpush1.bf16.msra.mxu0 %v479_v3  ;;  %298 = vmatprep.subr.bf16.mxu1 %v483_v6  ;;  %v487_v9 = vld [vmem:[%s679_s1 + $0x44] ss:$16 sps:$4 sm:$0xff]   ;;  %v489_v10 = vld [vmem:[%s679_s1 + $0x4c] ss:$16 sps:$4 sm:$0xff]   ;;  %v491_v15 = vld [vmem:[%s679_s1 + $0x40] ss:$16 sps:$4 sm:$0xff]  }
   0x5   :  { %257 = vmatprep.subr.bf16.mxu0 %v481_v5  ;;  %v492_v16 = vld [vmem:[%s679_s1 + $0x48] ss:$16 sps:$4 sm:$0xff]   ;;  %v493_v17 = vld [vmem:[%s679_s1 + $0x64] ss:$16 sps:$4 sm:$0xff]   ;;  %v495_v18 = vld [vmem:[%s679_s1 + $0x6c] ss:$16 sps:$4 sm:$0xff]  }
   0x6   :  { %v497_v19 = vld [vmem:[%s679_s1 + $0x60] ss:$16 sps:$4 sm:$0xff]   ;;  %v498_v20 = vld [vmem:[%s679_s1 + $0x68] ss:$16 sps:$4 sm:$0xff]   ;;  %v499_v21 = vld [vmem:[%s679_s1 + $0x84] ss:$16 sps:$4 sm:$0xff]  }
   0x7   :  { %299 = vmatpush1.bf16.msra.mxu1 %v486_v8  ;;  %v501_v22 = vld [vmem:[%s679_s1 + $0x8c] ss:$16 sps:$4 sm:$0xff]   ;;  %v503_v23 = vld [vmem:[%s679_s1 + $0x80] ss:$16 sps:$4 sm:$0xff]   ;;  %v504_v24 = vld [vmem:[%s679_s1 + $0x88] ss:$16 sps:$4 sm:$0xff]  }
   0x8   :  { %258 = vmatpush1.bf16.msra.mxu0 %v485_v7  ;;  %300 = vmatprep.subr.bf16.mxu1 %v489_v10  ;;  %v505_v25 = vld [vmem:[%s679_s1 + $0xa4] ss:$16 sps:$4 sm:$0xff]   ;;  %v507_v26 = vld [vmem:[%s679_s1 + $0xac] ss:$16 sps:$4 sm:$0xff]   ;;  %v509_v27 = vld [vmem:[%s679_s1 + $0xa0] ss:$16 sps:$4 sm:$0xff]  }
   0x9   :  { %259 = vmatprep.subr.bf16.mxu0 %v487_v9  ;;  %v510_v28 = vld [vmem:[%s679_s1 + $0xa8] ss:$16 sps:$4 sm:$0xff]   ;;  %v511_v29 = vld [vmem:[%s679_s1 + $0xc4] ss:$16 sps:$4 sm:$0xff]   ;;  %v513_v30 = vld [vmem:[%s679_s1 + $0xcc] ss:$16 sps:$4 sm:$0xff]  }
   0xa   :  { %v515_v32 = vld [vmem:[%s679_s1 + $0xc0] ss:$16 sps:$4 sm:$0xff]   ;;  %v516_v33 = vld [vmem:[%s679_s1 + $0xc8] ss:$16 sps:$4 sm:$0xff]   ;;  %v517_v34 = vld [vmem:[%s679_s1 + $0xe4] ss:$16 sps:$4 sm:$0xff]  }
   0xb   :  { %301 = vmatpush1.bf16.msra.mxu1 %v492_v16  ;;  %v519_v35 = vld [vmem:[%s679_s1 + $0xec] ss:$16 sps:$4 sm:$0xff]   ;;  %v521_v36 = vld [vmem:[%s679_s1 + $0xe0] ss:$16 sps:$4 sm:$0xff]   ;;  %v522_v37 = vld [vmem:[%s679_s1 + $0xe8] ss:$16 sps:$4 sm:$0xff]  }
   0xc   :  { %260 = vmatpush1.bf16.msra.mxu0 %v491_v15  ;;  %302 = vmatprep.subr.bf16.mxu1 %v495_v18  ;;  %v436_v42 = vld [vmem:[%s680_s2] ss:$0 sm:$0xff]  ;;  %v355_v49 = vshrl.u32 %v354_v48, 7 }
   0xd   :  { %261 = vmatprep.subr.bf16.mxu0 %v493_v17  ;;  %v437_v44 = vld [vmem:[%s681_s3] ss:$0 sm:$0xff] }
   0xe   :  { %v356_v50 = vsub.s32 0, %v355_v49  ;;  %v364_v51 = vsub.s32 2, %v355_v49  ;;  %v352_v52 = vld [vmem:[%s682_s4] sm:$0xf]  ;;  %v360_v53 = vsub.s32 1, %v355_v49  ;;  %v368_v54 = vsub.s32 3, %v355_v49 }
   0xf   :  { %303 = vmatpush1.bf16.msra.mxu1 %v498_v20 }
  0x10   :  { %262 = vmatpush1.bf16.msra.mxu0 %v497_v19  ;;  %304 = vmatprep.subr.bf16.mxu1 %v501_v22  ;;  %v357_v55 = vrot.slane %v352_v52, %v356_v50  ;;  %v365_v56 = vrot.slane %v352_v52, %v364_v51  ;;  %v361_v57 = vrot.slane %v352_v52, %v360_v53 }
  0x11   :  { %263 = vmatprep.subr.bf16.mxu0 %v499_v21  ;;  %v369_v58 = vrot.slane %v352_v52, %v368_v54 }
  0x13   :  { %305 = vmatpush1.bf16.msra.mxu1 %v504_v24 }
  0x14   :  { %264 = vmatpush1.bf16.msra.mxu0 %v503_v23  ;;  %306 = vmatprep.subr.bf16.mxu1 %v507_v26 }
  0x15   :  { %265 = vmatprep.subr.bf16.mxu0 %v505_v25 }
  0x17   :  { %307 = vmatpush1.bf16.msra.mxu1 %v510_v28 }
  0x18   :  { %266 = vmatpush1.bf16.msra.mxu0 %v509_v27  ;;  %308 = vmatprep.subr.bf16.mxu1 %v513_v30 }
  0x19   :  { %267 = vmatprep.subr.bf16.mxu0 %v511_v29 }
  0x1b   :  { %309 = vmatpush1.bf16.msra.mxu1 %v516_v33 }
  0x1c   :  { %268 = vmatpush1.bf16.msra.mxu0 %v515_v32  ;;  %310 = vmatprep.subr.bf16.mxu1 %v519_v35 }
  0x1d   :  { %269 = vmatprep.subr.bf16.mxu0 %v517_v34 }
  0x1f   :  { %311 = vmatpush1.bf16.msra.mxu1 %v522_v37 }
  0x20   :  { %270 = vmatpush1.bf16.msra.mxu0 %v521_v36 }
  0x8f   :  { %v31_v11 = vpop.xlane.xlu0 %30 }
  0x90   :  { %v33_v12 = vmul.f32 0.0078125, %v31_v11 }
  0x92   :  { %v34_v13 = vsub.f32 %v29_v0, %v33_v12 }
  0x94   :  { %v35_v14 = vmul.f32 %v34_v13, %v34_v13 }
  0x96   :  { %36 = vadd.xlane.f32.xlu0 %v35_v14 }
 0x123   :  { %v37_v38 = vpop.xlane.xlu0 %36 }
 0x124   :  { %v38_v39 = vmul.f32 0.0078125, %v37_v38 }
 0x126   :  { %v39_v40 = vadd.f32 1e-05, %v38_v39 }
 0x128   :  { %523 = vrsqrt.f32 %v39_v40 }
 0x132   :  { %v524_v41 = vpop.eup %523 }
 0x133   :  { %v41_v43 = vmul.f32 %v524_v41, %v34_v13 }
 0x135   :  { %v49_v45 = vmul.f32 %v436_v42, %v41_v43 }
 0x137   :  { %v57_v46 = vadd.f32 %v437_v44, %v49_v45 }
 0x139   :  { %v58_v47 = vpack.c.bf16 %v57_v46, %v57_v46 }
 0x13b   :  { %288 = vmatmul.mubr.bf16.vlgmr.msra.gmra.mrb[0].mxu0 %v58_v47  ;;  %329 = vmatmul.mubr.bf16.vlgmr.msra.gmra.mrb[0].mxu1 %v58_v47 }
 0x20e   :  { %v289_v59 = vpop.f32.mrb[0].mxu0  ;;  %v330_v60 = vpop.f32.mrb[0].mxu1 }
 0x20f   :  { %v374_v61 = vadd.f32 %v357_v55, %v289_v59  ;;  %v376_v62 = vadd.f32 %v365_v56, %v330_v60  ;;  %v291_v63 = vpop.f32.mrb[1].mxu0  ;;  %v332_v0 = vpop.f32.mrb[1].mxu1 }
 0x210   :  { %v375_v1 = vadd.f32 %v361_v57, %v291_v63  ;;  %v377_v2 = vadd.f32 %v369_v58, %v332_v0  ;;  %v293_v3 = vpop.f32.mrb[2].mxu0  ;;  %v334_v4 = vpop.f32.mrb[2].mxu1 }
 0x211   :  { %v382_v5 = vmul.f32 0.044715, %v374_v61  ;;  %v384_v6 = vmul.f32 0.044715, %v376_v62  ;;  %v294_v11 = vpop.f32.mrb[3].mxu0  ;;  %v335_v12 = vpop.f32.mrb[3].mxu1 }
 0x212   :  { %v383_v7 = vmul.f32 0.044715, %v375_v1  ;;  %v385_v8 = vmul.f32 0.044715, %v377_v2  ;;  %v378_v29 = vmul.f32 0.5, %v374_v61  ;;  %v380_v32 = vmul.f32 0.5, %v376_v62 }
 0x213   :  { %v386_v9 = vmul.f32 %v382_v5, %v374_v61  ;;  %v388_v10 = vmul.f32 %v384_v6, %v376_v62  ;;  %v379_v36 = vmul.f32 0.5, %v375_v1  ;;  %v381_v39 = vmul.f32 0.5, %v377_v2 }
 0x214   :  { %v387_v13 = vmul.f32 %v383_v7, %v375_v1  ;;  %v389_v14 = vmul.f32 %v385_v8, %v377_v2 }
 0x215   :  { %v390_v15 = vmul.f32 %v386_v9, %v374_v61  ;;  %v392_v16 = vmul.f32 %v388_v10, %v376_v62 }
 0x216   :  { %v391_v17 = vmul.f32 %v387_v13, %v375_v1  ;;  %v393_v18 = vmul.f32 %v389_v14, %v377_v2 }
 0x217   :  { %v394_v19 = vadd.f32 %v390_v15, %v374_v61  ;;  %v396_v20 = vadd.f32 %v392_v16, %v376_v62 }
 0x218   :  { %v395_v21 = vadd.f32 %v391_v17, %v375_v1  ;;  %v397_v22 = vadd.f32 %v393_v18, %v377_v2 }
 0x219   :  { %v398_v23 = vmul.f32 0.7978846, %v394_v19  ;;  %v400_v24 = vmul.f32 0.7978846, %v396_v20 }
 0x21a   :  { %v399_v25 = vmul.f32 0.7978846, %v395_v21  ;;  %v401_v26 = vmul.f32 0.7978846, %v397_v22 }
 0x21b   :  { %525 = vtanh.f32 %v398_v23 }
 0x21c   :  { %527 = vtanh.f32 %v400_v24 }
 0x21d   :  { %529 = vtanh.f32 %v399_v25 }
 0x21e   :  { %531 = vtanh.f32 %v401_v26 }
 0x225   :  { %v526_v27 = vpop.eup %525 }
 0x226   :  { %v528_v28 = vpop.eup %527  ;;  %v406_v30 = vadd.f32 1.0, %v526_v27 }
 0x227   :  { %v530_v31 = vpop.eup %529  ;;  %v408_v33 = vadd.f32 1.0, %v528_v28 }
 0x228   :  { %v532_v34 = vpop.eup %531  ;;  %v410_v35 = vmul.f32 %v406_v30, %v378_v29  ;;  %v407_v37 = vadd.f32 1.0, %v530_v31 }
 0x229   :  { %v412_v38 = vmul.f32 %v408_v33, %v380_v32  ;;  %v409_v40 = vadd.f32 1.0, %v532_v34 }
 0x22a   :  { %v411_v41 = vmul.f32 %v407_v37, %v379_v36 }
 0x22b   :  { %v413_v42 = vmul.f32 %v409_v40, %v381_v39 }
 0x22c   :  { %v472_v43 = vpack.c.bf16 %v411_v41, %v410_v35 }
 0x22d   :  { %v473_v44 = vpack.c.bf16 %v413_v42, %v412_v38 }
 0x22e   :  { %430 = vst [vmem:[%s683_s5] sm:$0xff] %v472_v43 }
 0x22f   :  { %431 = vst [vmem:[%s683_s5 + $0x8] sm:$0xff] %v473_v44 }

// kernel: forward.23
= control target key start
LH: loop header
LB: loop body
LE: loop exit
PB: predicated region body
PF: predicated region fallthrough
CT: control target
= control target key end

     0   :  { %s130_s0 = inlined_call_operand.vmem [shape: f32[8,128], index: 0, kind: input, shape index: {}]   ;;  %s131_s1 = inlined_call_operand.vmem [shape: f32[1,128], index: 1, kind: input, shape index: {}]   ;;  %s132_s2 = inlined_call_operand.vmem [shape: f32[1,128], index: 2, kind: input, shape index: {}]   ;;  %s133_s3 = inlined_call_operand.hbm [shape: f32[8,128], index: 3, kind: output, shape index: {}]  }
   0x1   :  { %v15_v0 = vld [vmem:[%s130_s0] sm:$0xff] }
   0x2   :  { %8 = vsyncpa [#allocation3], 0  ;;  %16 = vadd.xlane.f32.xlu0 %v15_v0  ;;  %v59_v9 = vld [vmem:[%s131_s1] ss:$0 sm:$0xff]  ;;  %s88_s0 = smov [#allocation2]  }
   0x3   :  { %v60_v11 = vld [vmem:[%s132_s2] ss:$0 sm:$0xff]  ;;  %s51_s18 = sshll.u32 %s88_s0, 4  ;;  %s52_s18 = int_to_ptr.vmem [resolvable:$true] %s51_s18 }
   0x4   :  { %s64_s19 = scalar_lea.vmem %s52_s18, 128  ;;  %p69_p1 = scmp.lt.s32.totalorder %s52_s18, %s52_s18 }
   0x5   :  { %p65_p0 = scmp.ne.s32.totalorder %s52_s18, %s64_s19  ;;  %p70_p2 = scmp.lt.s32.totalorder %s64_s19, %s64_s19 }
   0x7   :  { %p71_p3 = por %p70_p2, %p69_p1 }
   0x9   :  { %p72_p4 = pnand %p71_p3, %p65_p0 }
  0x8f   :  { %v17_v1 = vpop.xlane.xlu0 %16 }
  0x90   :  { %v19_v2 = vmul.f32 0.0078125, %v17_v1 }
  0x92   :  { %v20_v3 = vsub.f32 %v15_v0, %v19_v2 }
  0x94   :  { %v21_v4 = vmul.f32 %v20_v3, %v20_v3 }
  0x96   :  { %22 = vadd.xlane.f32.xlu0 %v21_v4 }
 0x123   :  { %v23_v5 = vpop.xlane.xlu0 %22 }
 0x124   :  { %v24_v6 = vmul.f32 0.0078125, %v23_v5 }
 0x126   :  { %v25_v7 = vadd.f32 1e-05, %v24_v6 }
 0x128   :  { %62 = vrsqrt.f32 %v25_v7 }
 0x132   :  { %v63_v8 = vpop.eup %62 }
 0x133   :  { %v27_v10 = vmul.f32 %v63_v8, %v20_v3 }
 0x135   :  { %v35_v12 = vmul.f32 %v59_v9, %v27_v10 }
 0x137   :  { %v43_v13 = vadd.f32 %v60_v11, %v35_v12 }
 0x139   :  { %44 = vst [vmem:[#allocation2] sm:$0xff] %v43_v13 }
 0x13a   :  { %75 = shalt.err (!%p72_p4)
}
 0x13b   :  { %s76_s21 = scalar_lea.hbm %s133_s3, 128 }
 0x13c   :  { %p77_p5 = scmp.ne.s32.totalorder %s133_s3, %s76_s21  ;;  %p80_p6 = scmp.lt.u32.totalorder %s76_s21, %s133_s3 }
 0x13e   :  { %p82_p7 = pnand %p80_p6, %p77_p5 }
 0x140   :  { %85 = shalt.err (!%p82_p7)
}
 0x141   :  { %54 = dma.vmem_to_hbm [thread:$0]  %s52_s18, 128, %s133_s3, [#allocation3]  }
 0x142   :  { %86 = dma.done.wait [#allocation3], 128  }
 0x143   :  { %87 = vsyncadd [#allocation3], 4294967168 }
 0x144   :  { %58 = vsyncpa [#allocation3], 1 }

// kernel: forward.17
= control target key start
LH: loop header
LB: loop body
LE: loop exit
PB: predicated region body
PF: predicated region fallthrough
CT: control target
= control target key end

     0   :  { %s650_s1 = inlined_call_operand.vmem [shape: bf16[512,128], index: 1, kind: input, shape index: {}]   ;;  %s651_s0 = inlined_call_operand.vmem [shape: bf16[8,512], index: 0, kind: input, shape index: {}]   ;;  %s652_s2 = inlined_call_operand.vmem [shape: f32[1,128], index: 2, kind: input, shape index: {}]   ;;  %s653_s3 = inlined_call_operand.vmem [shape: f32[8,128], index: 3, kind: input, shape index: {}]   ;;  %s654_s4 = inlined_call_operand.vmem [shape: f32[8,128], index: 4, kind: output, shape index: {}]  }
   0x1   :  { %v478_v0 = vld [vmem:[%s650_s1 + $0x40] sm:$0xff]   ;;  %v482_v4 = vld [vmem:[%s650_s1 + $0x48] sm:$0xff]   ;;  %v486_v8 = vld [vmem:[%s650_s1 + $0x50] sm:$0xff]  }
   0x2   :  { %v479_v1 = vld [vmem:[%s650_s1 + $0xc0] sm:$0xff]   ;;  %434 = vmatprep.subr.bf16.mxu0 %v478_v0  ;;  %v483_v5 = vld [vmem:[%s650_s1 + $0xc8] sm:$0xff]   ;;  %v487_v9 = vld [vmem:[%s650_s1 + $0xd0] sm:$0xff]  }
   0x3   :  { %v480_v2 = vld [vmem:[%s650_s1] sm:$0xff]   ;;  %456 = vmatprep.subr.bf16.mxu1 %v479_v1  ;;  %v484_v6 = vld [vmem:[%s650_s1 + $0x8] sm:$0xff]   ;;  %v488_v10 = vld [vmem:[%s650_s1 + $0x10] sm:$0xff]  }
   0x4   :  { %v481_v3 = vld [vmem:[%s650_s1 + $0x80] sm:$0xff]   ;;  %435 = vmatpush3.bf16.msra.mxu0 %v480_v2  ;;  %v485_v7 = vld [vmem:[%s650_s1 + $0x88] sm:$0xff]   ;;  %v489_v11 = vld [vmem:[%s650_s1 + $0x90] sm:$0xff]  }
   0x5   :  { %457 = vmatpush3.bf16.msra.mxu1 %v481_v3  ;;  %436 = vmatprep.subr.bf16.mxu0 %v482_v4  ;;  %v490_v12 = vld [vmem:[%s650_s1 + $0x58] sm:$0xff]   ;;  %v494_v16 = vld [vmem:[%s650_s1 + $0x60] sm:$0xff]   ;;  %v498_v20 = vld [vmem:[%s650_s1 + $0x68] sm:$0xff]  }
   0x6   :  { %458 = vmatprep.subr.bf16.mxu1 %v483_v5  ;;  %v491_v13 = vld [vmem:[%s650_s1 + $0xd8] sm:$0xff]   ;;  %v495_v17 = vld [vmem:[%s650_s1 + $0xe0] sm:$0xff]   ;;  %v499_v21 = vld [vmem:[%s650_s1 + $0xe8] sm:$0xff]  }
   0x7   :  { %v492_v14 = vld [vmem:[%s650_s1 + $0x18] sm:$0xff]   ;;  %v496_v18 = vld [vmem:[%s650_s1 + $0x20] sm:$0xff]   ;;  %v500_v22 = vld [vmem:[%s650_s1 + $0x28] sm:$0xff]  }
   0x8   :  { %437 = vmatpush3.bf16.msra.mxu0 %v484_v6  ;;  %v493_v15 = vld [vmem:[%s650_s1 + $0x98] sm:$0xff]   ;;  %v497_v19 = vld [vmem:[%s650_s1 + $0xa0] sm:$0xff]   ;;  %v501_v23 = vld [vmem:[%s650_s1 + $0xa8] sm:$0xff]  }
   0x9   :  { %459 = vmatpush3.bf16.msra.mxu1 %v485_v7  ;;  %438 = vmatprep.subr.bf16.mxu0 %v486_v8  ;;  %v502_v24 = vld [vmem:[%s650_s1 + $0x70] sm:$0xff]   ;;  %v506_v28 = vld [vmem:[%s650_s1 + $0x78] sm:$0xff]   ;;  %v23_v32 = vld [vmem:[%s651_s0] sm:$0xff] }
   0xa   :  { %460 = vmatprep.subr.bf16.mxu1 %v487_v9  ;;  %v503_v25 = vld [vmem:[%s650_s1 + $0xf0] sm:$0xff]   ;;  %v507_v29 = vld [vmem:[%s650_s1 + $0xf8] sm:$0xff]   ;;  %v24_v33 = vld [vmem:[%s651_s0 + $0x8] sm:$0xff]  ;;  %v397_v34 = vcombine.low %v23_v32, %v23_v32  ;;  %v398_v35 = vcombine.high %v23_v32, %v23_v32 }
   0xb   :  { %v504_v26 = vld [vmem:[%s650_s1 + $0x30] sm:$0xff]   ;;  %v508_v30 = vld [vmem:[%s650_s1 + $0x38] sm:$0xff]   ;;  %v399_v36 = vcombine.low %v24_v33, %v24_v33  ;;  %v400_v37 = vcombine.high %v24_v33, %v24_v33  ;;  %v433_v46 = vld [vmem:[%s652_s2] ss:$0 sm:$0xff] }
   0xc   :  { %439 = vmatpush3.bf16.msra.mxu0 %v488_v10  ;;  %v505_v27 = vld [vmem:[%s650_s1 + $0xb0] sm:$0xff]   ;;  %v509_v31 = vld [vmem:[%s650_s1 + $0xb8] sm:$0xff]   ;;  %328 = vmatprep.mubr.bf16.mxu0 %v398_v35  ;;  %v390_v50 = vld [vmem:[%s653_s3] sm:$0xff] }
   0xd   :  { %461 = vmatpush3.bf16.msra.mxu1 %v489_v11  ;;  %440 = vmatprep.subr.bf16.mxu0 %v490_v12 }
   0xe   :  { %462 = vmatprep.subr.bf16.mxu1 %v491_v13  ;;  %368 = vmatprep.mubr.bf16.mxu1 %v400_v37 }
  0x10   :  { %441 = vmatpush3.bf16.msra.mxu0 %v492_v14 }
  0x11   :  { %463 = vmatpush3.bf16.msra.mxu1 %v493_v15  ;;  %442 = vmatprep.subr.bf16.mxu0 %v494_v16 }
  0x12   :  { %464 = vmatprep.subr.bf16.mxu1 %v495_v17 }
  0x14   :  { %443 = vmatpush3.bf16.msra.mxu0 %v496_v18 }
  0x15   :  { %465 = vmatpush3.bf16.msra.mxu1 %v497_v19  ;;  %444 = vmatprep.subr.bf16.mxu0 %v498_v20 }
  0x16   :  { %466 = vmatprep.subr.bf16.mxu1 %v499_v21 }
  0x18   :  { %445 = vmatpush3.bf16.msra.mxu0 %v500_v22 }
  0x19   :  { %467 = vmatpush3.bf16.msra.mxu1 %v501_v23  ;;  %446 = vmatprep.subr.bf16.mxu0 %v502_v24 }
  0x1a   :  { %468 = vmatprep.subr.bf16.mxu1 %v503_v25 }
  0x1c   :  { %447 = vmatpush3.bf16.msra.mxu0 %v504_v26 }
  0x1d   :  { %469 = vmatpush3.bf16.msra.mxu1 %v505_v27  ;;  %448 = vmatprep.subr.bf16.mxu0 %v506_v28 }
  0x1e   :  { %470 = vmatprep.subr.bf16.mxu1 %v507_v29 }
  0x20   :  { %449 = vmatpush3.bf16.msra.mxu0 %v508_v30 }
  0x21   :  { %471 = vmatpush3.bf16.msra.mxu1 %v509_v31 }
  0x23   :  { %329 = vmatmul.mubr.bf16.vlgmr.msra.gmra.mrb[0].mxu0 %v397_v34 }
  0x24   :  { %369 = vmatmul.mubr.bf16.vlgmr.msra.gmra.mrb[0].mxu1 %v399_v36 }
  0xf6   :  { %v450_v38 = vpop.f32.mrb[0].mxu0 }
  0xf7   :  { %v472_v39 = vpop.f32.mrb[0].mxu1  ;;  %v451_v40 = vpop.f32.mrb[1].mxu0 }
  0xf8   :  { %v473_v41 = vpop.f32.mrb[1].mxu1  ;;  %v452_v42 = vadd.f32 %v451_v40, %v450_v38  ;;  %v453_v44 = vpop.f32.mrb[2].mxu0 }
  0xf9   :  { %v474_v43 = vadd.f32 %v473_v41, %v472_v39  ;;  %v475_v45 = vpop.f32.mrb[2].mxu1  ;;  %v454_v47 = vpop.f32.mrb[3].mxu0 }
  0xfa   :  { %v476_v48 = vpop.f32.mrb[3].mxu1 }
  0xfb   :  { %v371_v49 = vadd.f32 %v474_v43, %v452_v42 }
  0xfd   :  { %v389_v51 = vadd.f32 %v433_v46, %v371_v49 }
  0xff   :  { %v391_v52 = vadd.f32 %v390_v50, %v389_v51 }
 0x101   :  { %392 = vst [vmem:[%s654_s4] sm:$0xff] %v391_v52 }

</bundles_post_ra>
